<compile_context>
chip_gen: v6e
topology: v6e:2x2x1
jax: 0.10.0
libtpu: 0.0.40
codegen_flags: <defaults>
</compile_context>

<pallas_src>
import math
from functools import partial

import jax
import jax.numpy as jnp
from jax.experimental import pallas as pl
from jax.experimental.pallas import tpu as pltpu

EPS = 1e-5                      # F.group_norm default eps
NUM_GROUPS = 8                  # F.group_norm(x, 8)
LANE = 128
CDT = jnp.bfloat16              # MXU operand / HBM activation dtype
VMEM_LIMIT = 32 * 1024 * 1024   # safe on v5e/v6e/v7x
TILE_TARGET = 2048


def _cp():
    return pltpu.CompilerParams(dimension_semantics=("parallel", "parallel"),
                                vmem_limit_bytes=VMEM_LIMIT)


def _round_up(x, m):
    return (x + m - 1) // m * m


def _pick_tile(L, halo, target=TILE_TARGET):
    """Pick (T, H): H = rounded halo block (>=8), T divides L, T % H == 0."""
    H = max(8, _round_up(halo, 8))
    assert L % H == 0, f"L={L} must be a multiple of the rounded halo {H}"
    best = H
    t = H
    while t <= min(L, target):
        if L % t == 0:
            best = t
        t += H
    return best, H


def _halo_specs(L, C, T, H):
    """Main tile + left/right halo BlockSpecs over the SAME unpadded array."""
    r = T // H
    nH = L // H
    main = pl.BlockSpec((1, T, C), lambda b, l: (b, l, 0))
    left = pl.BlockSpec((1, H, C),
                        lambda b, l: (b, jnp.maximum(l * r - 1, 0), 0))
    right = pl.BlockSpec((1, H, C),
                         lambda b, l: (b, jnp.minimum((l + 1) * r, nH - 1), 0))
    return main, left, right


def _valid_mask(l, T, H, L):
    """(T+2H, 1) bool: window row maps to an original row inside [0, L)."""
    orig = l * T - H + jax.lax.broadcasted_iota(jnp.int32, (T + 2 * H, 1), 0)
    return (orig >= 0) & (orig < L)


def _tap_conv(window, w_ref, T, H, pad, dilation, K):
    """Per-tap matmuls, f32 accumulation.  window: (T+2H, C); w_ref: (K, C, Cout)."""
    acc = None
    for k in range(K):
        s = H - pad + k * dilation
        part = jnp.dot(window[s:s + T, :], w_ref[k],
                       preferred_element_type=jnp.float32)
        acc = part if acc is None else acc + part
    return acc                                                        # (T, Cout) f32


def _channel_stats(x):
    """x: (T, C) f32 -> (2, C) per-channel [sum, sumsq] (sublane reduce, no MXU)."""
    s1 = jnp.sum(x, axis=0, keepdims=True)
    s2 = jnp.sum(x * x, axis=0, keepdims=True)
    return jnp.concatenate([s1, s2], axis=0)


def _finalize_stats(stats, L, C):
    """(B, n_l, 2, C) partial sums -> (B, 2, C) [scale, shift]: y = x*scale + shift."""
    G = NUM_GROUPS
    Cg = C // G
    B = stats.shape[0]
    s = jnp.sum(stats, axis=1)                                        # (B, 2, C)
    sg = jnp.sum(s.reshape(B, 2, G, Cg), axis=-1)                     # (B, 2, G)
    n = L * Cg
    mean = sg[:, 0, :] / n
    var = jnp.maximum(sg[:, 1, :] / n - mean * mean, 0.0)
    rstd = jax.lax.rsqrt(var + EPS)
    scale = jnp.repeat(rstd, Cg, axis=-1)                             # (B, C)
    shift = jnp.repeat(-mean * rstd, Cg, axis=-1)
    return jnp.stack([scale, shift], axis=1)                          # (B, 2, C)


# ----------------------------------------------------------------------------
# Kernel 1: conv_in (k=3, 'same', bias) with the previous stage's GroupNorm
# (identity scale/shift for the first stage) fused in front of it.
# ----------------------------------------------------------------------------
def _conv_in_kernel(xm, xl, xr, ss_ref, w_ref, b_ref, o_ref,
                    *, K, dil, pad, T, H, L):
    l = pl.program_id(1)
    win = jnp.concatenate([xl[0], xm[0], xr[0]], axis=0).astype(jnp.float32)
    ss = ss_ref[0].astype(jnp.float32)                                # (2, Cin)
    win = win * ss[0:1, :] + ss[1:2, :]
    win = jnp.where(_valid_mask(l, T, H, L), win, 0.0).astype(CDT)
    acc = _tap_conv(win, w_ref, T, H, pad, dil, K)
    acc = acc + b_ref[...].astype(jnp.float32)
    o_ref[0] = acc.astype(o_ref.dtype)


def conv_in(x, ss, w, b):
    B, L, Cin = x.shape
    K, _, Cout = w.shape
    dil = 1
    pad = dil * (K - 1) // 2
    T, H = _pick_tile(L, pad)
    n_l = L // T
    main, left, right = _halo_specs(L, Cin, T, H)
    kern = partial(_conv_in_kernel, K=K, dil=dil, pad=pad, T=T, H=H, L=L)
    return pl.pallas_call(
        kern,
        out_shape=jax.ShapeDtypeStruct((B, L, Cout), CDT),
        grid=(B, n_l),
        in_specs=[main, left, right,
                  pl.BlockSpec((1, 2, Cin), lambda b, l: (b, 0, 0)),
                  pl.BlockSpec((K, Cin, Cout), lambda b, l: (0, 0, 0)),
                  pl.BlockSpec((1, Cout), lambda b, l: (0, 0))],
        out_specs=pl.BlockSpec((1, T, Cout), lambda b, l: (b, l, 0)),
        compiler_params=_cp(),
    )(x, x, x, ss, w, b.reshape(1, Cout))


# ----------------------------------------------------------------------------
# Kernel 2: fused residual block.
#   y_i   = conv1x1( tanh(filter(x)) * sigmoid(gate(x)) )
#   res_{i-1} = GN-apply(pre_{i-1})      (scale/shift supplied; skipped if i==0)
#   skip_{i-1} = skip_{i-2} + res_{i-1}
#   pre_i = res_{i-1} + y_i ;  per-tile per-channel [sum, sumsq] of pre_i
# ----------------------------------------------------------------------------
def _res_block_kernel(*refs, K, dil, pad, T, H, C, L, first, has_skip_in, write_y):
    l = pl.program_id(1)
    xm, xl, xr = refs[0], refs[1], refs[2]
    idx = 3
    if not first:
        pre_prev, ss_prev = refs[idx], refs[idx + 1]
        idx += 2
        if has_skip_in:
            skip_prev = refs[idx]
            idx += 1
    wfg, w1 = refs[idx], refs[idx + 1]
    outs = refs[idx + 2:]
    o = 0
    if write_y:
        y_ref = outs[o]
        o += 1
    pre_ref, stats_ref = outs[o], outs[o + 1]
    o += 2
    if not first:
        skip_out_ref = outs[o]

    win = jnp.concatenate([xl[0], xm[0], xr[0]], axis=0)              # (T+2H, C) bf16
    win = jnp.where(_valid_mask(l, T, H, L), win, jnp.zeros_like(win))

    fg = _tap_conv(win, wfg, T, H, pad, dil, K)                       # (T, 2C) f32
    gated = jnp.tanh(fg[:, :C]) * jax.nn.sigmoid(fg[:, C:])
    y = jnp.dot(gated.astype(CDT), w1[...], preferred_element_type=jnp.float32)

    if first:
        res_prev = xm[0].astype(jnp.float32)                          # res_{-1} == x_{-1}
    else:
        ss = ss_prev[0].astype(jnp.float32)                           # (2, C)
        res_prev = pre_prev[0].astype(jnp.float32) * ss[0:1, :] + ss[1:2, :]
        sk = res_prev
        if has_skip_in:
            sk = sk + skip_prev[0].astype(jnp.float32)
        skip_out_ref[0] = sk.astype(skip_out_ref.dtype)

    pre = res_prev + y
    if write_y:
        y_ref[0] = y.astype(y_ref.dtype)
    pre_ref[0] = pre.astype(pre_ref.dtype)
    stats_ref[0, 0] = _channel_stats(pre)


def res_block(x, wfg, w1, *, dilation, pre_prev=None, ss_prev=None,
              skip_prev=None, write_y=True):
    B, L, C = x.shape
    K = wfg.shape[0]
    pad = dilation * (K - 1) // 2
    T, H = _pick_tile(L, pad)
    n_l = L // T
    main, left, right = _halo_specs(L, C, T, H)
    first = pre_prev is None
    has_skip_in = skip_prev is not None

    in_specs = [main, left, right]
    args = [x, x, x]
    if not first:
        in_specs += [pl.BlockSpec((1, T, C), lambda b, l: (b, l, 0)),
                     pl.BlockSpec((1, 2, C), lambda b, l: (b, 0, 0))]
        args += [pre_prev, ss_prev]
        if has_skip_in:
            in_specs.append(pl.BlockSpec((1, T, C), lambda b, l: (b, l, 0)))
            args.append(skip_prev)
    in_specs += [pl.BlockSpec((K, C, 2 * C), lambda b, l: (0, 0, 0)),
                 pl.BlockSpec((C, C), lambda b, l: (0, 0))]
    args += [wfg, w1]

    out_shapes, out_specs = [], []
    if write_y:
        out_shapes.append(jax.ShapeDtypeStruct((B, L, C), CDT))
        out_specs.append(pl.BlockSpec((1, T, C), lambda b, l: (b, l, 0)))
    out_shapes += [jax.ShapeDtypeStruct((B, L, C), CDT),
                   jax.ShapeDtypeStruct((B, n_l, 2, C), jnp.float32)]
    out_specs += [pl.BlockSpec((1, T, C), lambda b, l: (b, l, 0)),
                  pl.BlockSpec((1, 1, 2, C), lambda b, l: (b, l, 0, 0))]
    if not first:
        out_shapes.append(jax.ShapeDtypeStruct((B, L, C), CDT))
        out_specs.append(pl.BlockSpec((1, T, C), lambda b, l: (b, l, 0)))

    kern = partial(_res_block_kernel, K=K, dil=dilation, pad=pad, T=T, H=H,
                   C=C, L=L, first=first, has_skip_in=has_skip_in, write_y=write_y)
    outs = pl.pallas_call(
        kern,
        out_shape=tuple(out_shapes),
        grid=(B, n_l),
        in_specs=in_specs,
        out_specs=tuple(out_specs),
        compiler_params=_cp(),
    )(*args)

    i = 0
    y = None
    if write_y:
        y = outs[i]
        i += 1
    pre, stats = outs[i], outs[i + 1]
    i += 2
    skip = outs[i] if not first else None
    return y, pre, stats, skip


# ----------------------------------------------------------------------------
# Kernel 3: finalize the skip sum: res_last = GN-apply(pre_last);
#           skip_total = skip_prev + res_last; per-tile stats of skip_total.
# ----------------------------------------------------------------------------
def _skip_final_kernel(*refs, has_skip_in):
    if has_skip_in:
        pre_ref, ss_ref, skip_ref, out_ref, stats_ref = refs
    else:
        pre_ref, ss_ref, out_ref, stats_ref = refs
    ss = ss_ref[0].astype(jnp.float32)
    res = pre_ref[0].astype(jnp.float32) * ss[0:1, :] + ss[1:2, :]
    if has_skip_in:
        res = res + skip_ref[0].astype(jnp.float32)
    out_ref[0] = res.astype(out_ref.dtype)
    stats_ref[0, 0] = _channel_stats(res)


def skip_finalize(pre, ss, skip_prev):
    B, L, C = pre.shape
    T, _ = _pick_tile(L, 0)
    n_l = L // T
    has_skip = skip_prev is not None
    in_specs = [pl.BlockSpec((1, T, C), lambda b, l: (b, l, 0)),
                pl.BlockSpec((1, 2, C), lambda b, l: (b, 0, 0))]
    args = [pre, ss]
    if has_skip:
        in_specs.append(pl.BlockSpec((1, T, C), lambda b, l: (b, l, 0)))
        args.append(skip_prev)
    return pl.pallas_call(
        partial(_skip_final_kernel, has_skip_in=has_skip),
        out_shape=(jax.ShapeDtypeStruct((B, L, C), CDT),
                   jax.ShapeDtypeStruct((B, n_l, 2, C), jnp.float32)),
        grid=(B, n_l),
        in_specs=in_specs,
        out_specs=(pl.BlockSpec((1, T, C), lambda b, l: (b, l, 0)),
                   pl.BlockSpec((1, 1, 2, C), lambda b, l: (b, l, 0, 0))),
        compiler_params=_cp(),
    )(*args)


# ----------------------------------------------------------------------------
# Kernel 4: fused tail: GN(skip) -> gelu -> conv1 -> gelu -> conv2 -> 1x1 head.
# ----------------------------------------------------------------------------
def _tail_kernel(xm, xl, xr, ss_ref, w1_ref, b1_ref, w2_ref, b2_ref,
                 wh_ref, bh_ref, o_ref, *, T, H, L):
    l = pl.program_id(1)
    win = jnp.concatenate([xl[0], xm[0], xr[0]], axis=0).astype(jnp.float32)
    ss = ss_ref[0].astype(jnp.float32)
    win = win * ss[0:1, :] + ss[1:2, :]                               # final GroupNorm
    win = jnp.where(_valid_mask(l, T, H, L), win, 0.0)
    # gelu(GN(skip)); rows ~ original [l*T-2, l*T+T+2)
    a = jax.nn.gelu(win[H - 2:H + T + 2, :], approximate=True).astype(CDT)
    # conv1 ('same', k=3): rows ~ original [l*T-1, l*T+T+1)
    c1 = None
    for k in range(3):
        p = jnp.dot(a[k:k + T + 2, :], w1_ref[k], preferred_element_type=jnp.float32)
        c1 = p if c1 is None else c1 + p
    c1 = c1 + b1_ref[...].astype(jnp.float32)
    h = jax.nn.gelu(c1, approximate=True)
    # conv2's zero padding acts on gelu(conv1(.)): zero rows outside [0, L)
    orig1 = l * T - 1 + jax.lax.broadcasted_iota(jnp.int32, (T + 2, 1), 0)
    h = jnp.where((orig1 >= 0) & (orig1 < L), h, 0.0).astype(CDT)
    # conv2 ('same', k=3): rows ~ original [l*T, l*T+T)
    c2 = None
    for k in range(3):
        p = jnp.dot(h[k:k + T, :], w2_ref[k], preferred_element_type=jnp.float32)
        c2 = p if c2 is None else c2 + p
    c2 = c2 + b2_ref[...].astype(jnp.float32)
    # 1x1 classification head, lane-dense padded output
    out = jnp.dot(c2.astype(CDT), wh_ref[...], preferred_element_type=jnp.float32)
    out = out + bh_ref[...].astype(jnp.float32)
    o_ref[0] = out.astype(o_ref.dtype)


def tail_forward(skip, ss, params, num_classes):
    B, L, C = skip.shape
    T, H = _pick_tile(L, 2)                       # two chained k=3 'same' convs
    n_l = L // T
    cpad = params["head_w"].shape[1]
    main, left, right = _halo_specs(L, C, T, H)
    kern = partial(_tail_kernel, T=T, H=H, L=L)
    out = pl.pallas_call(
        kern,
        out_shape=jax.ShapeDtypeStruct((B, L, cpad), jnp.float32),
        grid=(B, n_l),
        in_specs=[main, left, right,
                  pl.BlockSpec((1, 2, C), lambda b, l: (b, 0, 0)),
                  pl.BlockSpec((3, C, C), lambda b, l: (0, 0, 0)),
                  pl.BlockSpec((1, C), lambda b, l: (0, 0)),
                  pl.BlockSpec((3, C, C), lambda b, l: (0, 0, 0)),
                  pl.BlockSpec((1, C), lambda b, l: (0, 0)),
                  pl.BlockSpec((C, cpad), lambda b, l: (0, 0)),
                  pl.BlockSpec((1, cpad), lambda b, l: (0, 0))],
        out_specs=pl.BlockSpec((1, T, cpad), lambda b, l: (b, l, 0)),
        compiler_params=_cp(),
    )(skip, skip, skip, ss,
      params["conv1_w"], params["conv1_b"].reshape(1, C),
      params["conv2_w"], params["conv2_b"].reshape(1, C),
      params["head_w"], params["head_b"].reshape(1, cpad))
    return out[:, :, :num_classes]


# ----------------------------------------------------------------------------
# Model glue (plain JAX orchestration of the Pallas kernels)
# ----------------------------------------------------------------------------
def res_blocks_forward(x, res_params, depth):
    B, L, C = x.shape
    pre = None
    ss = None
    skip = None
    for i in range(depth):
        p = res_params[i]
        y, pre_i, stats_i, skip_i = res_block(
            x, p["wfg"], p["w1"], dilation=2 ** i,
            pre_prev=pre, ss_prev=ss, skip_prev=skip,
            write_y=(i < depth - 1))
        ss = _finalize_stats(stats_i, L, C)
        pre = pre_i
        if i > 0:
            skip = skip_i
        if y is not None:
            x = y
    skip_total, skip_stats = skip_finalize(pre, ss, skip)
    return skip_total, _finalize_stats(skip_stats, L, C)


def model_forward(x_ncl, params, *, channels, depth, num_classes):
    x = jnp.transpose(x_ncl, (0, 2, 1)).astype(jnp.float32)           # NCL -> (B, L, C)
    B = x.shape[0]
    # identity scale/shift for the first stage's conv_in
    ss = jnp.concatenate([jnp.ones((B, 1, channels[0]), jnp.float32),
                          jnp.zeros((B, 1, channels[0]), jnp.float32)], axis=1)
    for bi in range(len(channels) - 1):
        bp = params["blocks"][bi]
        a = conv_in(x, ss, bp["conv_in_w"], bp["conv_in_b"])
        x, ss = res_blocks_forward(a, bp["res"], depth)
    return tail_forward(x, ss, params, num_classes)


# ----------------------------------------------------------------------------
# Deterministic parameter init (shapes follow the PyTorch module __init__)
# ----------------------------------------------------------------------------
def init_params(key, channels, depth, num_classes):
    keys = iter(jax.random.split(key, 256))

    def w(shape, fan_in):
        return (jax.random.normal(next(keys), shape, jnp.float32)
                / math.sqrt(fan_in)).astype(CDT)

    def bias(shape):
        return 0.01 * jax.random.normal(next(keys), shape, jnp.float32)

    params = {"blocks": []}
    for bi in range(len(channels) - 1):
        cin, cout = channels[bi], channels[bi + 1]
        assert cout % NUM_GROUPS == 0
        bp = {"conv_in_w": w((3, cin, cout), 3 * cin),                 # k=3, bias=True
              "conv_in_b": bias((cout,)),
              "res": []}
        for _ in range(depth):
            wf = w((3, cout, cout), 3 * cout)                          # filter (bias=False)
            wg = w((3, cout, cout), 3 * cout)                          # gate   (bias=False)
            bp["res"].append({"wfg": jnp.concatenate([wf, wg], axis=-1),  # (3, C, 2C)
                              "w1": w((cout, cout), cout)})            # 1x1 join conv
        params["blocks"].append(bp)

    c = channels[-1]
    cpad = _round_up(num_classes, LANE)
    head_w = jnp.zeros((c, cpad), CDT).at[:, :num_classes].set(w((c, num_classes), c))
    head_b = jnp.zeros((cpad,), jnp.float32).at[:num_classes].set(bias((num_classes,)))
    params.update({"conv1_w": w((3, c, c), 3 * c), "conv1_b": bias((c,)),
                   "conv2_w": w((3, c, c), 3 * c), "conv2_b": bias((c,)),
                   "head_w": head_w, "head_b": head_b})
    return params


if __name__ == "__main__":
    channels = [4, 32]          # channels[-1] divisible by 8 (group-norm groups)
    depth = 2
    num_classes = 7
    B, L = 2, 16

    key = jax.random.PRNGKey(0)
    kx, kp = jax.random.split(key)
    x = jax.random.normal(kx, (B, channels[0], L), jnp.float32)       # PyTorch NCL input
    params = init_params(kp, channels, depth, num_classes)

    fwd = jax.jit(partial(model_forward, channels=tuple(channels), depth=depth,
                          num_classes=num_classes))
    out = jax.block_until_ready(fwd(x, params))

    assert out.shape == (B, L, num_classes), out.shape
    assert bool(jnp.all(jnp.isfinite(out)))
    print("KERNEL_OK")
</pallas_src>

<mosaic_0001>
module attributes {stable_mosaic.version = 11 : i64} {
  func.func @_res_block_kernel(%arg0: i32, %arg1: i32, %arg2: memref<1x16x32xbf16, #tpu.memory_space<vmem>>, %arg3: memref<1x8x32xbf16, #tpu.memory_space<vmem>>, %arg4: memref<1x8x32xbf16, #tpu.memory_space<vmem>>, %arg5: memref<3x32x64xbf16, #tpu.memory_space<vmem>>, %arg6: memref<32x32xbf16, #tpu.memory_space<vmem>>, %arg7: memref<1x16x32xbf16, #tpu.memory_space<vmem>>, %arg8: memref<1x16x32xbf16, #tpu.memory_space<vmem>>, %arg9: memref<1x1x2x32xf32, #tpu.memory_space<vmem>>) attributes {dimension_semantics = [#tpu.dimension_semantics<parallel>, #tpu.dimension_semantics<parallel>], iteration_bounds = array<i64: 2, 1>, scalar_prefetch = 0 : i64, scratch_operands = 0 : i64, tpu.core_type = #tpu.core_type<tc>, window_params = [{transform_indices = @transform_0, window_bounds = array<i64: 1, 16, 32>}, {transform_indices = @transform_1, window_bounds = array<i64: 1, 8, 32>}, {transform_indices = @transform_2, window_bounds = array<i64: 1, 8, 32>}, {pipeline_mode = #tpu.pipeline_mode<synchronous>, transform_indices = @transform_3, window_bounds = array<i64: 3, 32, 64>}, {pipeline_mode = #tpu.pipeline_mode<synchronous>, transform_indices = @transform_4, window_bounds = array<i64: 32, 32>}, {transform_indices = @transform_5, window_bounds = array<i64: 1, 16, 32>}, {transform_indices = @transform_6, window_bounds = array<i64: 1, 16, 32>}, {transform_indices = @transform_7, window_bounds = array<i64: 1, 1, 2, 32>}]} {
    %c0 = arith.constant 0 : index
    %c0_0 = arith.constant 0 : index
    %c0_1 = arith.constant 0 : index
    %0 = vector.load %arg3[%c0, %c0_0, %c0_1] : memref<1x8x32xbf16, #tpu.memory_space<vmem>>, vector<1x8x32xbf16>
    %1 = vector.shape_cast %0 : vector<1x8x32xbf16> to vector<8x32xbf16>
    %c0_2 = arith.constant 0 : index
    %c0_3 = arith.constant 0 : index
    %c0_4 = arith.constant 0 : index
    %2 = vector.load %arg2[%c0_2, %c0_3, %c0_4] : memref<1x16x32xbf16, #tpu.memory_space<vmem>>, vector<1x16x32xbf16>
    %3 = vector.shape_cast %2 : vector<1x16x32xbf16> to vector<16x32xbf16>
    %c0_5 = arith.constant 0 : index
    %c0_6 = arith.constant 0 : index
    %c0_7 = arith.constant 0 : index
    %4 = vector.load %arg4[%c0_5, %c0_6, %c0_7] : memref<1x8x32xbf16, #tpu.memory_space<vmem>>, vector<1x8x32xbf16>
    %5 = vector.shape_cast %4 : vector<1x8x32xbf16> to vector<8x32xbf16>
    %6 = tpu.concatenate %1, %3, %5 in 0 : vector<8x32xbf16>, vector<16x32xbf16>, vector<8x32xbf16> -> vector<32x32xbf16>
    %c16_i32 = arith.constant 16 : i32
    %7 = arith.muli %arg1, %c16_i32 : i32
    %c8_i32 = arith.constant 8 : i32
    %8 = arith.subi %7, %c8_i32 : i32
    %9 = tpu.iota {dimensions = array<i32: 0>} : vector<32x1xi32>
    %10 = vector.broadcast %8 : i32 to vector<32x1xi32>
    %11 = arith.addi %10, %9 : vector<32x1xi32>
    %c0_i32 = arith.constant 0 : i32
    %12 = vector.broadcast %c0_i32 : i32 to vector<32x1xi32>
    %13 = arith.cmpi sge, %11, %12 : vector<32x1xi32>
    %c16_i32_8 = arith.constant 16 : i32
    %14 = vector.broadcast %c16_i32_8 : i32 to vector<32x1xi32>
    %15 = arith.cmpi slt, %11, %14 : vector<32x1xi32>
    %16 = arith.andi %13, %15 : vector<32x1xi1>
    %cst = arith.constant 0.000000e+00 : bf16
    %17 = vector.broadcast %cst : bf16 to vector<32x32xbf16>
    %18 = vector.shape_cast %16 : vector<32x1xi1> to vector<32x1xi1>
    %19 = vector.broadcast %18 : vector<32x1xi1> to vector<32x32xi1>
    %20 = arith.select %19, %6, %17 : vector<32x32xi1>, vector<32x32xbf16>
    %21 = vector.extract_strided_slice %20 {offsets = [7, 0], sizes = [16, 32], strides = [1, 1]} : vector<32x32xbf16> to vector<16x32xbf16>
    %c0_9 = arith.constant 0 : index
    %c0_10 = arith.constant 0 : index
    %c0_11 = arith.constant 0 : index
    %22 = vector.load %arg5[%c0_9, %c0_10, %c0_11] : memref<3x32x64xbf16, #tpu.memory_space<vmem>>, vector<1x32x64xbf16>
    %23 = vector.shape_cast %22 : vector<1x32x64xbf16> to vector<32x64xbf16>
    %cst_12 = arith.constant dense<0.000000e+00> : vector<16x64xf32>
    %24 = tpu.matmul %21, %23, %cst_12 {dimension_numbers = #tpu.dot_dimension_numbers<[1], [0], [0], [1], [0, 0, 1, 1], [], []>} : vector<16x32xbf16>, vector<32x64xbf16>, vector<16x64xf32> -> vector<16x64xf32>
    %25 = vector.extract_strided_slice %20 {offsets = [8, 0], sizes = [16, 32], strides = [1, 1]} : vector<32x32xbf16> to vector<16x32xbf16>
    %c1 = arith.constant 1 : index
    %c0_13 = arith.constant 0 : index
    %c0_14 = arith.constant 0 : index
    %26 = vector.load %arg5[%c1, %c0_13, %c0_14] : memref<3x32x64xbf16, #tpu.memory_space<vmem>>, vector<1x32x64xbf16>
    %27 = vector.shape_cast %26 : vector<1x32x64xbf16> to vector<32x64xbf16>
    %cst_15 = arith.constant dense<0.000000e+00> : vector<16x64xf32>
    %28 = tpu.matmul %25, %27, %cst_15 {dimension_numbers = #tpu.dot_dimension_numbers<[1], [0], [0], [1], [0, 0, 1, 1], [], []>} : vector<16x32xbf16>, vector<32x64xbf16>, vector<16x64xf32> -> vector<16x64xf32>
    %29 = arith.addf %24, %28 : vector<16x64xf32>
    %30 = vector.extract_strided_slice %20 {offsets = [9, 0], sizes = [16, 32], strides = [1, 1]} : vector<32x32xbf16> to vector<16x32xbf16>
    %c2 = arith.constant 2 : index
    %c0_16 = arith.constant 0 : index
    %c0_17 = arith.constant 0 : index
    %31 = vector.load %arg5[%c2, %c0_16, %c0_17] : memref<3x32x64xbf16, #tpu.memory_space<vmem>>, vector<1x32x64xbf16>
    %32 = vector.shape_cast %31 : vector<1x32x64xbf16> to vector<32x64xbf16>
    %cst_18 = arith.constant dense<0.000000e+00> : vector<16x64xf32>
    %33 = tpu.matmul %30, %32, %cst_18 {dimension_numbers = #tpu.dot_dimension_numbers<[1], [0], [0], [1], [0, 0, 1, 1], [], []>} : vector<16x32xbf16>, vector<32x64xbf16>, vector<16x64xf32> -> vector<16x64xf32>
    %34 = arith.addf %29, %33 : vector<16x64xf32>
    %35 = vector.extract_strided_slice %34 {offsets = [0, 0], sizes = [16, 32], strides = [1, 1]} : vector<16x64xf32> to vector<16x32xf32>
    %36 = math.tanh %35 : vector<16x32xf32>
    %37 = vector.extract_strided_slice %34 {offsets = [0, 32], sizes = [16, 32], strides = [1, 1]} : vector<16x64xf32> to vector<16x32xf32>
    %38 = arith.negf %37 : vector<16x32xf32>
    %39 = math.exp %38 : vector<16x32xf32>
    %cst_19 = arith.constant 1.000000e+00 : f32
    %40 = vector.broadcast %cst_19 : f32 to vector<16x32xf32>
    %41 = arith.addf %40, %39 : vector<16x32xf32>
    %42 = arith.divf %40, %41 : vector<16x32xf32>
    %43 = arith.mulf %36, %42 : vector<16x32xf32>
    %44 = arith.truncf %43 : vector<16x32xf32> to vector<16x32xbf16>
    %c0_20 = arith.constant 0 : index
    %c0_21 = arith.constant 0 : index
    %45 = vector.load %arg6[%c0_20, %c0_21] : memref<32x32xbf16, #tpu.memory_space<vmem>>, vector<32x32xbf16>
    %cst_22 = arith.constant dense<0.000000e+00> : vector<16x32xf32>
    %46 = tpu.matmul %44, %45, %cst_22 {dimension_numbers = #tpu.dot_dimension_numbers<[1], [0], [0], [1], [0, 0, 1, 1], [], []>} : vector<16x32xbf16>, vector<32x32xbf16>, vector<16x32xf32> -> vector<16x32xf32>
    %c0_23 = arith.constant 0 : index
    %c0_24 = arith.constant 0 : index
    %c0_25 = arith.constant 0 : index
    %47 = vector.load %arg2[%c0_23, %c0_24, %c0_25] : memref<1x16x32xbf16, #tpu.memory_space<vmem>>, vector<1x16x32xbf16>
    %48 = vector.shape_cast %47 : vector<1x16x32xbf16> to vector<16x32xbf16>
    %49 = arith.extf %48 : vector<16x32xbf16> to vector<16x32xf32>
    %50 = arith.addf %49, %46 : vector<16x32xf32>
    %51 = arith.truncf %46 : vector<16x32xf32> to vector<16x32xbf16>
    %c0_26 = arith.constant 0 : index
    %c0_27 = arith.constant 0 : index
    %c0_28 = arith.constant 0 : index
    %52 = vector.load %arg7[%c0_26, %c0_27, %c0_28] : memref<1x16x32xbf16, #tpu.memory_space<vmem>>, vector<1x16x32xbf16>
    %53 = vector.shape_cast %52 : vector<1x16x32xbf16> to vector<16x32xbf16>
    %54 = vector.shape_cast %51 : vector<16x32xbf16> to vector<1x16x32xbf16>
    tpu.vector_store %arg7[%c0_26, %c0_27, %c0_28], %54 {strides = array<i32>} : memref<1x16x32xbf16, #tpu.memory_space<vmem>>, vector<1x16x32xbf16>,
    %55 = arith.truncf %50 : vector<16x32xf32> to vector<16x32xbf16>
    %c0_29 = arith.constant 0 : index
    %c0_30 = arith.constant 0 : index
    %c0_31 = arith.constant 0 : index
    %56 = vector.load %arg8[%c0_29, %c0_30, %c0_31] : memref<1x16x32xbf16, #tpu.memory_space<vmem>>, vector<1x16x32xbf16>
    %57 = vector.shape_cast %56 : vector<1x16x32xbf16> to vector<16x32xbf16>
    %58 = vector.shape_cast %55 : vector<16x32xbf16> to vector<1x16x32xbf16>
    tpu.vector_store %arg8[%c0_29, %c0_30, %c0_31], %58 {strides = array<i32>} : memref<1x16x32xbf16, #tpu.memory_space<vmem>>, vector<1x16x32xbf16>,
    %cst_32 = arith.constant dense<0.000000e+00> : vector<32xf32>
    %59 = vector.multi_reduction <add>, %50, %cst_32 [0] : vector<16x32xf32> to vector<32xf32>
    %60 = vector.shape_cast %59 : vector<32xf32> to vector<1x32xf32>
    %61 = arith.mulf %50, %50 : vector<16x32xf32>
    %cst_33 = arith.constant dense<0.000000e+00> : vector<32xf32>
    %62 = vector.multi_reduction <add>, %61, %cst_33 [0] : vector<16x32xf32> to vector<32xf32>
    %63 = vector.shape_cast %62 : vector<32xf32> to vector<1x32xf32>
    %64 = tpu.concatenate %60, %63 in 0 : vector<1x32xf32>, vector<1x32xf32> -> vector<2x32xf32>
    %c0_34 = arith.constant 0 : index
    %c0_35 = arith.constant 0 : index
    %c0_36 = arith.constant 0 : index
    %c0_37 = arith.constant 0 : index
    %65 = vector.load %arg9[%c0_34, %c0_35, %c0_36, %c0_37] : memref<1x1x2x32xf32, #tpu.memory_space<vmem>>, vector<1x1x2x32xf32>
    %66 = vector.shape_cast %65 : vector<1x1x2x32xf32> to vector<2x32xf32>
    %67 = vector.shape_cast %64 : vector<2x32xf32> to vector<1x1x2x32xf32>
    tpu.vector_store %arg9[%c0_34, %c0_35, %c0_36, %c0_37], %67 {strides = array<i32>} : memref<1x1x2x32xf32, #tpu.memory_space<vmem>>, vector<1x1x2x32xf32>,
    return
  }
  func.func @transform_0(%arg0: i32, %arg1: i32) -> (i32, i32, i32) {
    %c0_i32 = arith.constant 0 : i32
    %c0_i32_0 = arith.constant 0 : i32
    return %arg0, %arg1, %c0_i32 : i32, i32, i32
  }
  func.func @transform_1(%arg0: i32, %arg1: i32) -> (i32, i32, i32) {
    %c2_i32 = arith.constant 2 : i32
    %0 = arith.muli %arg1, %c2_i32 : i32
    %c1_i32 = arith.constant 1 : i32
    %1 = arith.subi %0, %c1_i32 : i32
    %c0_i32 = arith.constant 0 : i32
    %2 = arith.maxsi %1, %c0_i32 : i32
    %c0_i32_0 = arith.constant 0 : i32
    %c0_i32_1 = arith.constant 0 : i32
    return %arg0, %2, %c0_i32_0 : i32, i32, i32
  }
  func.func @transform_2(%arg0: i32, %arg1: i32) -> (i32, i32, i32) {
    %c1_i32 = arith.constant 1 : i32
    %0 = arith.addi %arg1, %c1_i32 : i32
    %c2_i32 = arith.constant 2 : i32
    %1 = arith.muli %0, %c2_i32 : i32
    %c1_i32_0 = arith.constant 1 : i32
    %2 = arith.minsi %1, %c1_i32_0 : i32
    %c0_i32 = arith.constant 0 : i32
    %c0_i32_1 = arith.constant 0 : i32
    return %arg0, %2, %c0_i32 : i32, i32, i32
  }
  func.func @transform_3(%arg0: i32, %arg1: i32) -> (i32, i32, i32) {
    %c0_i32 = arith.constant 0 : i32
    %c0_i32_0 = arith.constant 0 : i32
    %c0_i32_1 = arith.constant 0 : i32
    %c0_i32_2 = arith.constant 0 : i32
    return %c0_i32, %c0_i32_0, %c0_i32_1 : i32, i32, i32
  }
  func.func @transform_4(%arg0: i32, %arg1: i32) -> (i32, i32) {
    %c0_i32 = arith.constant 0 : i32
    %c0_i32_0 = arith.constant 0 : i32
    %c0_i32_1 = arith.constant 0 : i32
    return %c0_i32, %c0_i32_0 : i32, i32
  }
  func.func @transform_5(%arg0: i32, %arg1: i32) -> (i32, i32, i32) {
    %c0_i32 = arith.constant 0 : i32
    %c0_i32_0 = arith.constant 0 : i32
    return %arg0, %arg1, %c0_i32 : i32, i32, i32
  }
  func.func @transform_6(%arg0: i32, %arg1: i32) -> (i32, i32, i32) {
    %c0_i32 = arith.constant 0 : i32
    %c0_i32_0 = arith.constant 0 : i32
    return %arg0, %arg1, %c0_i32 : i32, i32, i32
  }
  func.func @transform_7(%arg0: i32, %arg1: i32) -> (i32, i32, i32, i32) {
    %c0_i32 = arith.constant 0 : i32
    %c0_i32_0 = arith.constant 0 : i32
    %c0_i32_1 = arith.constant 0 : i32
    return %arg0, %arg1, %c0_i32, %c0_i32_0 : i32, i32, i32, i32
  }
}

module attributes {stable_mosaic.version = 11 : i64} {
  func.func @_conv_in_kernel(%arg0: i32, %arg1: i32, %arg2: memref<1x16x4xf32, #tpu.memory_space<vmem>>, %arg3: memref<1x8x4xf32, #tpu.memory_space<vmem>>, %arg4: memref<1x8x4xf32, #tpu.memory_space<vmem>>, %arg5: memref<1x2x4xf32, #tpu.memory_space<vmem>>, %arg6: memref<3x4x32xbf16, #tpu.memory_space<vmem>>, %arg7: memref<1x32xf32, #tpu.memory_space<vmem>>, %arg8: memref<1x16x32xbf16, #tpu.memory_space<vmem>>) attributes {dimension_semantics = [#tpu.dimension_semantics<parallel>, #tpu.dimension_semantics<parallel>], iteration_bounds = array<i64: 2, 1>, scalar_prefetch = 0 : i64, scratch_operands = 0 : i64, tpu.core_type = #tpu.core_type<tc>, window_params = [{transform_indices = @transform_0, window_bounds = array<i64: 1, 16, 4>}, {transform_indices = @transform_1, window_bounds = array<i64: 1, 8, 4>}, {transform_indices = @transform_2, window_bounds = array<i64: 1, 8, 4>}, {transform_indices = @transform_3, window_bounds = array<i64: 1, 2, 4>}, {pipeline_mode = #tpu.pipeline_mode<synchronous>, transform_indices = @transform_4, window_bounds = array<i64: 3, 4, 32>}, {pipeline_mode = #tpu.pipeline_mode<synchronous>, transform_indices = @transform_5, window_bounds = array<i64: 1, 32>}, {transform_indices = @transform_6, window_bounds = array<i64: 1, 16, 32>}]} {
    %c0 = arith.constant 0 : index
    %c0_0 = arith.constant 0 : index
    %c0_1 = arith.constant 0 : index
    %0 = vector.load %arg3[%c0, %c0_0, %c0_1] : memref<1x8x4xf32, #tpu.memory_space<vmem>>, vector<1x8x4xf32>
    %1 = vector.shape_cast %0 : vector<1x8x4xf32> to vector<8x4xf32>
    %c0_2 = arith.constant 0 : index
    %c0_3 = arith.constant 0 : index
    %c0_4 = arith.constant 0 : index
    %2 = vector.load %arg2[%c0_2, %c0_3, %c0_4] : memref<1x16x4xf32, #tpu.memory_space<vmem>>, vector<1x16x4xf32>
    %3 = vector.shape_cast %2 : vector<1x16x4xf32> to vector<16x4xf32>
    %c0_5 = arith.constant 0 : index
    %c0_6 = arith.constant 0 : index
    %c0_7 = arith.constant 0 : index
    %4 = vector.load %arg4[%c0_5, %c0_6, %c0_7] : memref<1x8x4xf32, #tpu.memory_space<vmem>>, vector<1x8x4xf32>
    %5 = vector.shape_cast %4 : vector<1x8x4xf32> to vector<8x4xf32>
    %6 = tpu.concatenate %1, %3, %5 in 0 : vector<8x4xf32>, vector<16x4xf32>, vector<8x4xf32> -> vector<32x4xf32>
    %c0_8 = arith.constant 0 : index
    %c0_9 = arith.constant 0 : index
    %c0_10 = arith.constant 0 : index
    %7 = vector.load %arg5[%c0_8, %c0_9, %c0_10] : memref<1x2x4xf32, #tpu.memory_space<vmem>>, vector<1x2x4xf32>
    %8 = vector.shape_cast %7 : vector<1x2x4xf32> to vector<2x4xf32>
    %9 = vector.extract_strided_slice %8 {offsets = [0, 0], sizes = [1, 4], strides = [1, 1]} : vector<2x4xf32> to vector<1x4xf32>
    %10 = vector.broadcast %9 : vector<1x4xf32> to vector<32x4xf32>
    %11 = arith.mulf %6, %10 : vector<32x4xf32>
    %12 = vector.extract_strided_slice %8 {offsets = [1, 0], sizes = [1, 4], strides = [1, 1]} : vector<2x4xf32> to vector<1x4xf32>
    %13 = vector.broadcast %12 : vector<1x4xf32> to vector<32x4xf32>
    %14 = arith.addf %11, %13 : vector<32x4xf32>
    %c16_i32 = arith.constant 16 : i32
    %15 = arith.muli %arg1, %c16_i32 : i32
    %c8_i32 = arith.constant 8 : i32
    %16 = arith.subi %15, %c8_i32 : i32
    %17 = tpu.iota {dimensions = array<i32: 0>} : vector<32x1xi32>
    %18 = vector.broadcast %16 : i32 to vector<32x1xi32>
    %19 = arith.addi %18, %17 : vector<32x1xi32>
    %c0_i32 = arith.constant 0 : i32
    %20 = vector.broadcast %c0_i32 : i32 to vector<32x1xi32>
    %21 = arith.cmpi sge, %19, %20 : vector<32x1xi32>
    %c16_i32_11 = arith.constant 16 : i32
    %22 = vector.broadcast %c16_i32_11 : i32 to vector<32x1xi32>
    %23 = arith.cmpi slt, %19, %22 : vector<32x1xi32>
    %24 = arith.andi %21, %23 : vector<32x1xi1>
    %cst = arith.constant 0.000000e+00 : f32
    %25 = vector.shape_cast %24 : vector<32x1xi1> to vector<32x1xi1>
    %26 = vector.broadcast %25 : vector<32x1xi1> to vector<32x4xi1>
    %27 = vector.broadcast %cst : f32 to vector<32x4xf32>
    %28 = arith.select %26, %14, %27 : vector<32x4xi1>, vector<32x4xf32>
    %29 = arith.truncf %28 : vector<32x4xf32> to vector<32x4xbf16>
    %30 = vector.extract_strided_slice %29 {offsets = [7, 0], sizes = [16, 4], strides = [1, 1]} : vector<32x4xbf16> to vector<16x4xbf16>
    %c0_12 = arith.constant 0 : index
    %c0_13 = arith.constant 0 : index
    %c0_14 = arith.constant 0 : index
    %31 = vector.load %arg6[%c0_12, %c0_13, %c0_14] : memref<3x4x32xbf16, #tpu.memory_space<vmem>>, vector<1x4x32xbf16>
    %32 = vector.shape_cast %31 : vector<1x4x32xbf16> to vector<4x32xbf16>
    %cst_15 = arith.constant dense<0.000000e+00> : vector<16x32xf32>
    %33 = tpu.matmul %30, %32, %cst_15 {dimension_numbers = #tpu.dot_dimension_numbers<[1], [0], [0], [1], [0, 0, 1, 1], [], []>} : vector<16x4xbf16>, vector<4x32xbf16>, vector<16x32xf32> -> vector<16x32xf32>
    %34 = vector.extract_strided_slice %29 {offsets = [8, 0], sizes = [16, 4], strides = [1, 1]} : vector<32x4xbf16> to vector<16x4xbf16>
    %c1 = arith.constant 1 : index
    %c0_16 = arith.constant 0 : index
    %c0_17 = arith.constant 0 : index
    %35 = vector.load %arg6[%c1, %c0_16, %c0_17] : memref<3x4x32xbf16, #tpu.memory_space<vmem>>, vector<1x4x32xbf16>
    %36 = vector.shape_cast %35 : vector<1x4x32xbf16> to vector<4x32xbf16>
    %cst_18 = arith.constant dense<0.000000e+00> : vector<16x32xf32>
    %37 = tpu.matmul %34, %36, %cst_18 {dimension_numbers = #tpu.dot_dimension_numbers<[1], [0], [0], [1], [0, 0, 1, 1], [], []>} : vector<16x4xbf16>, vector<4x32xbf16>, vector<16x32xf32> -> vector<16x32xf32>
    %38 = arith.addf %33, %37 : vector<16x32xf32>
    %39 = vector.extract_strided_slice %29 {offsets = [9, 0], sizes = [16, 4], strides = [1, 1]} : vector<32x4xbf16> to vector<16x4xbf16>
    %c2 = arith.constant 2 : index
    %c0_19 = arith.constant 0 : index
    %c0_20 = arith.constant 0 : index
    %40 = vector.load %arg6[%c2, %c0_19, %c0_20] : memref<3x4x32xbf16, #tpu.memory_space<vmem>>, vector<1x4x32xbf16>
    %41 = vector.shape_cast %40 : vector<1x4x32xbf16> to vector<4x32xbf16>
    %cst_21 = arith.constant dense<0.000000e+00> : vector<16x32xf32>
    %42 = tpu.matmul %39, %41, %cst_21 {dimension_numbers = #tpu.dot_dimension_numbers<[1], [0], [0], [1], [0, 0, 1, 1], [], []>} : vector<16x4xbf16>, vector<4x32xbf16>, vector<16x32xf32> -> vector<16x32xf32>
    %43 = arith.addf %38, %42 : vector<16x32xf32>
    %c0_22 = arith.constant 0 : index
    %c0_23 = arith.constant 0 : index
    %44 = vector.load %arg7[%c0_22, %c0_23] : memref<1x32xf32, #tpu.memory_space<vmem>>, vector<1x32xf32>
    %45 = vector.broadcast %44 : vector<1x32xf32> to vector<16x32xf32>
    %46 = arith.addf %43, %45 : vector<16x32xf32>
    %47 = arith.truncf %46 : vector<16x32xf32> to vector<16x32xbf16>
    %c0_24 = arith.constant 0 : index
    %c0_25 = arith.constant 0 : index
    %c0_26 = arith.constant 0 : index
    %48 = vector.load %arg8[%c0_24, %c0_25, %c0_26] : memref<1x16x32xbf16, #tpu.memory_space<vmem>>, vector<1x16x32xbf16>
    %49 = vector.shape_cast %48 : vector<1x16x32xbf16> to vector<16x32xbf16>
    %50 = vector.shape_cast %47 : vector<16x32xbf16> to vector<1x16x32xbf16>
    tpu.vector_store %arg8[%c0_24, %c0_25, %c0_26], %50 {strides = array<i32>} : memref<1x16x32xbf16, #tpu.memory_space<vmem>>, vector<1x16x32xbf16>,
    return
  }
  func.func @transform_0(%arg0: i32, %arg1: i32) -> (i32, i32, i32) {
    %c0_i32 = arith.constant 0 : i32
    %c0_i32_0 = arith.constant 0 : i32
    return %arg0, %arg1, %c0_i32 : i32, i32, i32
  }
  func.func @transform_1(%arg0: i32, %arg1: i32) -> (i32, i32, i32) {
    %c2_i32 = arith.constant 2 : i32
    %0 = arith.muli %arg1, %c2_i32 : i32
    %c1_i32 = arith.constant 1 : i32
    %1 = arith.subi %0, %c1_i32 : i32
    %c0_i32 = arith.constant 0 : i32
    %2 = arith.maxsi %1, %c0_i32 : i32
    %c0_i32_0 = arith.constant 0 : i32
    %c0_i32_1 = arith.constant 0 : i32
    return %arg0, %2, %c0_i32_0 : i32, i32, i32
  }
  func.func @transform_2(%arg0: i32, %arg1: i32) -> (i32, i32, i32) {
    %c1_i32 = arith.constant 1 : i32
    %0 = arith.addi %arg1, %c1_i32 : i32
    %c2_i32 = arith.constant 2 : i32
    %1 = arith.muli %0, %c2_i32 : i32
    %c1_i32_0 = arith.constant 1 : i32
    %2 = arith.minsi %1, %c1_i32_0 : i32
    %c0_i32 = arith.constant 0 : i32
    %c0_i32_1 = arith.constant 0 : i32
    return %arg0, %2, %c0_i32 : i32, i32, i32
  }
  func.func @transform_3(%arg0: i32, %arg1: i32) -> (i32, i32, i32) {
    %c0_i32 = arith.constant 0 : i32
    %c0_i32_0 = arith.constant 0 : i32
    %c0_i32_1 = arith.constant 0 : i32
    return %arg0, %c0_i32, %c0_i32_0 : i32, i32, i32
  }
  func.func @transform_4(%arg0: i32, %arg1: i32) -> (i32, i32, i32) {
    %c0_i32 = arith.constant 0 : i32
    %c0_i32_0 = arith.constant 0 : i32
    %c0_i32_1 = arith.constant 0 : i32
    %c0_i32_2 = arith.constant 0 : i32
    return %c0_i32, %c0_i32_0, %c0_i32_1 : i32, i32, i32
  }
  func.func @transform_5(%arg0: i32, %arg1: i32) -> (i32, i32) {
    %c0_i32 = arith.constant 0 : i32
    %c0_i32_0 = arith.constant 0 : i32
    %c0_i32_1 = arith.constant 0 : i32
    return %c0_i32, %c0_i32_0 : i32, i32
  }
  func.func @transform_6(%arg0: i32, %arg1: i32) -> (i32, i32, i32) {
    %c0_i32 = arith.constant 0 : i32
    %c0_i32_0 = arith.constant 0 : i32
    return %arg0, %arg1, %c0_i32 : i32, i32, i32
  }
}

module attributes {stable_mosaic.version = 11 : i64} {
  func.func @_res_block_kernel(%arg0: i32, %arg1: i32, %arg2: memref<1x16x32xbf16, #tpu.memory_space<vmem>>, %arg3: memref<1x8x32xbf16, #tpu.memory_space<vmem>>, %arg4: memref<1x8x32xbf16, #tpu.memory_space<vmem>>, %arg5: memref<1x16x32xbf16, #tpu.memory_space<vmem>>, %arg6: memref<1x2x32xf32, #tpu.memory_space<vmem>>, %arg7: memref<3x32x64xbf16, #tpu.memory_space<vmem>>, %arg8: memref<32x32xbf16, #tpu.memory_space<vmem>>, %arg9: memref<1x16x32xbf16, #tpu.memory_space<vmem>>, %arg10: memref<1x1x2x32xf32, #tpu.memory_space<vmem>>, %arg11: memref<1x16x32xbf16, #tpu.memory_space<vmem>>) attributes {dimension_semantics = [#tpu.dimension_semantics<parallel>, #tpu.dimension_semantics<parallel>], iteration_bounds = array<i64: 2, 1>, scalar_prefetch = 0 : i64, scratch_operands = 0 : i64, tpu.core_type = #tpu.core_type<tc>, window_params = [{transform_indices = @transform_0, window_bounds = array<i64: 1, 16, 32>}, {transform_indices = @transform_1, window_bounds = array<i64: 1, 8, 32>}, {transform_indices = @transform_2, window_bounds = array<i64: 1, 8, 32>}, {transform_indices = @transform_3, window_bounds = array<i64: 1, 16, 32>}, {transform_indices = @transform_4, window_bounds = array<i64: 1, 2, 32>}, {pipeline_mode = #tpu.pipeline_mode<synchronous>, transform_indices = @transform_5, window_bounds = array<i64: 3, 32, 64>}, {pipeline_mode = #tpu.pipeline_mode<synchronous>, transform_indices = @transform_6, window_bounds = array<i64: 32, 32>}, {transform_indices = @transform_7, window_bounds = array<i64: 1, 16, 32>}, {transform_indices = @transform_8, window_bounds = array<i64: 1, 1, 2, 32>}, {transform_indices = @transform_9, window_bounds = array<i64: 1, 16, 32>}]} {
    %c0 = arith.constant 0 : index
    %c0_0 = arith.constant 0 : index
    %c0_1 = arith.constant 0 : index
    %0 = vector.load %arg3[%c0, %c0_0, %c0_1] : memref<1x8x32xbf16, #tpu.memory_space<vmem>>, vector<1x8x32xbf16>
    %1 = vector.shape_cast %0 : vector<1x8x32xbf16> to vector<8x32xbf16>
    %c0_2 = arith.constant 0 : index
    %c0_3 = arith.constant 0 : index
    %c0_4 = arith.constant 0 : index
    %2 = vector.load %arg2[%c0_2, %c0_3, %c0_4] : memref<1x16x32xbf16, #tpu.memory_space<vmem>>, vector<1x16x32xbf16>
    %3 = vector.shape_cast %2 : vector<1x16x32xbf16> to vector<16x32xbf16>
    %c0_5 = arith.constant 0 : index
    %c0_6 = arith.constant 0 : index
    %c0_7 = arith.constant 0 : index
    %4 = vector.load %arg4[%c0_5, %c0_6, %c0_7] : memref<1x8x32xbf16, #tpu.memory_space<vmem>>, vector<1x8x32xbf16>
    %5 = vector.shape_cast %4 : vector<1x8x32xbf16> to vector<8x32xbf16>
    %6 = tpu.concatenate %1, %3, %5 in 0 : vector<8x32xbf16>, vector<16x32xbf16>, vector<8x32xbf16> -> vector<32x32xbf16>
    %c16_i32 = arith.constant 16 : i32
    %7 = arith.muli %arg1, %c16_i32 : i32
    %c8_i32 = arith.constant 8 : i32
    %8 = arith.subi %7, %c8_i32 : i32
    %9 = tpu.iota {dimensions = array<i32: 0>} : vector<32x1xi32>
    %10 = vector.broadcast %8 : i32 to vector<32x1xi32>
    %11 = arith.addi %10, %9 : vector<32x1xi32>
    %c0_i32 = arith.constant 0 : i32
    %12 = vector.broadcast %c0_i32 : i32 to vector<32x1xi32>
    %13 = arith.cmpi sge, %11, %12 : vector<32x1xi32>
    %c16_i32_8 = arith.constant 16 : i32
    %14 = vector.broadcast %c16_i32_8 : i32 to vector<32x1xi32>
    %15 = arith.cmpi slt, %11, %14 : vector<32x1xi32>
    %16 = arith.andi %13, %15 : vector<32x1xi1>
    %cst = arith.constant 0.000000e+00 : bf16
    %17 = vector.broadcast %cst : bf16 to vector<32x32xbf16>
    %18 = vector.shape_cast %16 : vector<32x1xi1> to vector<32x1xi1>
    %19 = vector.broadcast %18 : vector<32x1xi1> to vector<32x32xi1>
    %20 = arith.select %19, %6, %17 : vector<32x32xi1>, vector<32x32xbf16>
    %21 = vector.extract_strided_slice %20 {offsets = [6, 0], sizes = [16, 32], strides = [1, 1]} : vector<32x32xbf16> to vector<16x32xbf16>
    %c0_9 = arith.constant 0 : index
    %c0_10 = arith.constant 0 : index
    %c0_11 = arith.constant 0 : index
    %22 = vector.load %arg7[%c0_9, %c0_10, %c0_11] : memref<3x32x64xbf16, #tpu.memory_space<vmem>>, vector<1x32x64xbf16>
    %23 = vector.shape_cast %22 : vector<1x32x64xbf16> to vector<32x64xbf16>
    %cst_12 = arith.constant dense<0.000000e+00> : vector<16x64xf32>
    %24 = tpu.matmul %21, %23, %cst_12 {dimension_numbers = #tpu.dot_dimension_numbers<[1], [0], [0], [1], [0, 0, 1, 1], [], []>} : vector<16x32xbf16>, vector<32x64xbf16>, vector<16x64xf32> -> vector<16x64xf32>
    %25 = vector.extract_strided_slice %20 {offsets = [8, 0], sizes = [16, 32], strides = [1, 1]} : vector<32x32xbf16> to vector<16x32xbf16>
    %c1 = arith.constant 1 : index
    %c0_13 = arith.constant 0 : index
    %c0_14 = arith.constant 0 : index
    %26 = vector.load %arg7[%c1, %c0_13, %c0_14] : memref<3x32x64xbf16, #tpu.memory_space<vmem>>, vector<1x32x64xbf16>
    %27 = vector.shape_cast %26 : vector<1x32x64xbf16> to vector<32x64xbf16>
    %cst_15 = arith.constant dense<0.000000e+00> : vector<16x64xf32>
    %28 = tpu.matmul %25, %27, %cst_15 {dimension_numbers = #tpu.dot_dimension_numbers<[1], [0], [0], [1], [0, 0, 1, 1], [], []>} : vector<16x32xbf16>, vector<32x64xbf16>, vector<16x64xf32> -> vector<16x64xf32>
    %29 = arith.addf %24, %28 : vector<16x64xf32>
    %30 = vector.extract_strided_slice %20 {offsets = [10, 0], sizes = [16, 32], strides = [1, 1]} : vector<32x32xbf16> to vector<16x32xbf16>
    %c2 = arith.constant 2 : index
    %c0_16 = arith.constant 0 : index
    %c0_17 = arith.constant 0 : index
    %31 = vector.load %arg7[%c2, %c0_16, %c0_17] : memref<3x32x64xbf16, #tpu.memory_space<vmem>>, vector<1x32x64xbf16>
    %32 = vector.shape_cast %31 : vector<1x32x64xbf16> to vector<32x64xbf16>
    %cst_18 = arith.constant dense<0.000000e+00> : vector<16x64xf32>
    %33 = tpu.matmul %30, %32, %cst_18 {dimension_numbers = #tpu.dot_dimension_numbers<[1], [0], [0], [1], [0, 0, 1, 1], [], []>} : vector<16x32xbf16>, vector<32x64xbf16>, vector<16x64xf32> -> vector<16x64xf32>
    %34 = arith.addf %29, %33 : vector<16x64xf32>
    %35 = vector.extract_strided_slice %34 {offsets = [0, 0], sizes = [16, 32], strides = [1, 1]} : vector<16x64xf32> to vector<16x32xf32>
    %36 = math.tanh %35 : vector<16x32xf32>
    %37 = vector.extract_strided_slice %34 {offsets = [0, 32], sizes = [16, 32], strides = [1, 1]} : vector<16x64xf32> to vector<16x32xf32>
    %38 = arith.negf %37 : vector<16x32xf32>
    %39 = math.exp %38 : vector<16x32xf32>
    %cst_19 = arith.constant 1.000000e+00 : f32
    %40 = vector.broadcast %cst_19 : f32 to vector<16x32xf32>
    %41 = arith.addf %40, %39 : vector<16x32xf32>
    %42 = arith.divf %40, %41 : vector<16x32xf32>
    %43 = arith.mulf %36, %42 : vector<16x32xf32>
    %44 = arith.truncf %43 : vector<16x32xf32> to vector<16x32xbf16>
    %c0_20 = arith.constant 0 : index
    %c0_21 = arith.constant 0 : index
    %45 = vector.load %arg8[%c0_20, %c0_21] : memref<32x32xbf16, #tpu.memory_space<vmem>>, vector<32x32xbf16>
    %cst_22 = arith.constant dense<0.000000e+00> : vector<16x32xf32>
    %46 = tpu.matmul %44, %45, %cst_22 {dimension_numbers = #tpu.dot_dimension_numbers<[1], [0], [0], [1], [0, 0, 1, 1], [], []>} : vector<16x32xbf16>, vector<32x32xbf16>, vector<16x32xf32> -> vector<16x32xf32>
    %c0_23 = arith.constant 0 : index
    %c0_24 = arith.constant 0 : index
    %c0_25 = arith.constant 0 : index
    %47 = vector.load %arg6[%c0_23, %c0_24, %c0_25] : memref<1x2x32xf32, #tpu.memory_space<vmem>>, vector<1x2x32xf32>
    %48 = vector.shape_cast %47 : vector<1x2x32xf32> to vector<2x32xf32>
    %c0_26 = arith.constant 0 : index
    %c0_27 = arith.constant 0 : index
    %c0_28 = arith.constant 0 : index
    %49 = vector.load %arg5[%c0_26, %c0_27, %c0_28] : memref<1x16x32xbf16, #tpu.memory_space<vmem>>, vector<1x16x32xbf16>
    %50 = vector.shape_cast %49 : vector<1x16x32xbf16> to vector<16x32xbf16>
    %51 = arith.extf %50 : vector<16x32xbf16> to vector<16x32xf32>
    %52 = vector.extract_strided_slice %48 {offsets = [0, 0], sizes = [1, 32], strides = [1, 1]} : vector<2x32xf32> to vector<1x32xf32>
    %53 = vector.broadcast %52 : vector<1x32xf32> to vector<16x32xf32>
    %54 = arith.mulf %51, %53 : vector<16x32xf32>
    %55 = vector.extract_strided_slice %48 {offsets = [1, 0], sizes = [1, 32], strides = [1, 1]} : vector<2x32xf32> to vector<1x32xf32>
    %56 = vector.broadcast %55 : vector<1x32xf32> to vector<16x32xf32>
    %57 = arith.addf %54, %56 : vector<16x32xf32>
    %58 = arith.truncf %57 : vector<16x32xf32> to vector<16x32xbf16>
    %c0_29 = arith.constant 0 : index
    %c0_30 = arith.constant 0 : index
    %c0_31 = arith.constant 0 : index
    %59 = vector.load %arg11[%c0_29, %c0_30, %c0_31] : memref<1x16x32xbf16, #tpu.memory_space<vmem>>, vector<1x16x32xbf16>
    %60 = vector.shape_cast %59 : vector<1x16x32xbf16> to vector<16x32xbf16>
    %61 = vector.shape_cast %58 : vector<16x32xbf16> to vector<1x16x32xbf16>
    tpu.vector_store %arg11[%c0_29, %c0_30, %c0_31], %61 {strides = array<i32>} : memref<1x16x32xbf16, #tpu.memory_space<vmem>>, vector<1x16x32xbf16>,
    %62 = arith.addf %57, %46 : vector<16x32xf32>
    %63 = arith.truncf %62 : vector<16x32xf32> to vector<16x32xbf16>
    %c0_32 = arith.constant 0 : index
    %c0_33 = arith.constant 0 : index
    %c0_34 = arith.constant 0 : index
    %64 = vector.load %arg9[%c0_32, %c0_33, %c0_34] : memref<1x16x32xbf16, #tpu.memory_space<vmem>>, vector<1x16x32xbf16>
    %65 = vector.shape_cast %64 : vector<1x16x32xbf16> to vector<16x32xbf16>
    %66 = vector.shape_cast %63 : vector<16x32xbf16> to vector<1x16x32xbf16>
    tpu.vector_store %arg9[%c0_32, %c0_33, %c0_34], %66 {strides = array<i32>} : memref<1x16x32xbf16, #tpu.memory_space<vmem>>, vector<1x16x32xbf16>,
    %cst_35 = arith.constant dense<0.000000e+00> : vector<32xf32>
    %67 = vector.multi_reduction <add>, %62, %cst_35 [0] : vector<16x32xf32> to vector<32xf32>
    %68 = vector.shape_cast %67 : vector<32xf32> to vector<1x32xf32>
    %69 = arith.mulf %62, %62 : vector<16x32xf32>
    %cst_36 = arith.constant dense<0.000000e+00> : vector<32xf32>
    %70 = vector.multi_reduction <add>, %69, %cst_36 [0] : vector<16x32xf32> to vector<32xf32>
    %71 = vector.shape_cast %70 : vector<32xf32> to vector<1x32xf32>
    %72 = tpu.concatenate %68, %71 in 0 : vector<1x32xf32>, vector<1x32xf32> -> vector<2x32xf32>
    %c0_37 = arith.constant 0 : index
    %c0_38 = arith.constant 0 : index
    %c0_39 = arith.constant 0 : index
    %c0_40 = arith.constant 0 : index
    %73 = vector.load %arg10[%c0_37, %c0_38, %c0_39, %c0_40] : memref<1x1x2x32xf32, #tpu.memory_space<vmem>>, vector<1x1x2x32xf32>
    %74 = vector.shape_cast %73 : vector<1x1x2x32xf32> to vector<2x32xf32>
    %75 = vector.shape_cast %72 : vector<2x32xf32> to vector<1x1x2x32xf32>
    tpu.vector_store %arg10[%c0_37, %c0_38, %c0_39, %c0_40], %75 {strides = array<i32>} : memref<1x1x2x32xf32, #tpu.memory_space<vmem>>, vector<1x1x2x32xf32>,
    return
  }
  func.func @transform_0(%arg0: i32, %arg1: i32) -> (i32, i32, i32) {
    %c0_i32 = arith.constant 0 : i32
    %c0_i32_0 = arith.constant 0 : i32
    return %arg0, %arg1, %c0_i32 : i32, i32, i32
  }
  func.func @transform_1(%arg0: i32, %arg1: i32) -> (i32, i32, i32) {
    %c2_i32 = arith.constant 2 : i32
    %0 = arith.muli %arg1, %c2_i32 : i32
    %c1_i32 = arith.constant 1 : i32
    %1 = arith.subi %0, %c1_i32 : i32
    %c0_i32 = arith.constant 0 : i32
    %2 = arith.maxsi %1, %c0_i32 : i32
    %c0_i32_0 = arith.constant 0 : i32
    %c0_i32_1 = arith.constant 0 : i32
    return %arg0, %2, %c0_i32_0 : i32, i32, i32
  }
  func.func @transform_2(%arg0: i32, %arg1: i32) -> (i32, i32, i32) {
    %c1_i32 = arith.constant 1 : i32
    %0 = arith.addi %arg1, %c1_i32 : i32
    %c2_i32 = arith.constant 2 : i32
    %1 = arith.muli %0, %c2_i32 : i32
    %c1_i32_0 = arith.constant 1 : i32
    %2 = arith.minsi %1, %c1_i32_0 : i32
    %c0_i32 = arith.constant 0 : i32
    %c0_i32_1 = arith.constant 0 : i32
    return %arg0, %2, %c0_i32 : i32, i32, i32
  }
  func.func @transform_3(%arg0: i32, %arg1: i32) -> (i32, i32, i32) {
    %c0_i32 = arith.constant 0 : i32
    %c0_i32_0 = arith.constant 0 : i32
    return %arg0, %arg1, %c0_i32 : i32, i32, i32
  }
  func.func @transform_4(%arg0: i32, %arg1: i32) -> (i32, i32, i32) {
    %c0_i32 = arith.constant 0 : i32
    %c0_i32_0 = arith.constant 0 : i32
    %c0_i32_1 = arith.constant 0 : i32
    return %arg0, %c0_i32, %c0_i32_0 : i32, i32, i32
  }
  func.func @transform_5(%arg0: i32, %arg1: i32) -> (i32, i32, i32) {
    %c0_i32 = arith.constant 0 : i32
    %c0_i32_0 = arith.constant 0 : i32
    %c0_i32_1 = arith.constant 0 : i32
    %c0_i32_2 = arith.constant 0 : i32
    return %c0_i32, %c0_i32_0, %c0_i32_1 : i32, i32, i32
  }
  func.func @transform_6(%arg0: i32, %arg1: i32) -> (i32, i32) {
    %c0_i32 = arith.constant 0 : i32
    %c0_i32_0 = arith.constant 0 : i32
    %c0_i32_1 = arith.constant 0 : i32
    return %c0_i32, %c0_i32_0 : i32, i32
  }
  func.func @transform_7(%arg0: i32, %arg1: i32) -> (i32, i32, i32) {
    %c0_i32 = arith.constant 0 : i32
    %c0_i32_0 = arith.constant 0 : i32
    return %arg0, %arg1, %c0_i32 : i32, i32, i32
  }
  func.func @transform_8(%arg0: i32, %arg1: i32) -> (i32, i32, i32, i32) {
    %c0_i32 = arith.constant 0 : i32
    %c0_i32_0 = arith.constant 0 : i32
    %c0_i32_1 = arith.constant 0 : i32
    return %arg0, %arg1, %c0_i32, %c0_i32_0 : i32, i32, i32, i32
  }
  func.func @transform_9(%arg0: i32, %arg1: i32) -> (i32, i32, i32) {
    %c0_i32 = arith.constant 0 : i32
    %c0_i32_0 = arith.constant 0 : i32
    return %arg0, %arg1, %c0_i32 : i32, i32, i32
  }
}

module attributes {stable_mosaic.version = 11 : i64} {
  func.func @_skip_final_kernel(%arg0: i32, %arg1: i32, %arg2: memref<1x16x32xbf16, #tpu.memory_space<vmem>>, %arg3: memref<1x2x32xf32, #tpu.memory_space<vmem>>, %arg4: memref<1x16x32xbf16, #tpu.memory_space<vmem>>, %arg5: memref<1x16x32xbf16, #tpu.memory_space<vmem>>, %arg6: memref<1x1x2x32xf32, #tpu.memory_space<vmem>>) attributes {dimension_semantics = [#tpu.dimension_semantics<parallel>, #tpu.dimension_semantics<parallel>], iteration_bounds = array<i64: 2, 1>, scalar_prefetch = 0 : i64, scratch_operands = 0 : i64, tpu.core_type = #tpu.core_type<tc>, window_params = [{transform_indices = @transform_0, window_bounds = array<i64: 1, 16, 32>}, {transform_indices = @transform_1, window_bounds = array<i64: 1, 2, 32>}, {transform_indices = @transform_2, window_bounds = array<i64: 1, 16, 32>}, {transform_indices = @transform_3, window_bounds = array<i64: 1, 16, 32>}, {transform_indices = @transform_4, window_bounds = array<i64: 1, 1, 2, 32>}]} {
    %c0 = arith.constant 0 : index
    %c0_0 = arith.constant 0 : index
    %c0_1 = arith.constant 0 : index
    %0 = vector.load %arg3[%c0, %c0_0, %c0_1] : memref<1x2x32xf32, #tpu.memory_space<vmem>>, vector<1x2x32xf32>
    %1 = vector.shape_cast %0 : vector<1x2x32xf32> to vector<2x32xf32>
    %c0_2 = arith.constant 0 : index
    %c0_3 = arith.constant 0 : index
    %c0_4 = arith.constant 0 : index
    %2 = vector.load %arg2[%c0_2, %c0_3, %c0_4] : memref<1x16x32xbf16, #tpu.memory_space<vmem>>, vector<1x16x32xbf16>
    %3 = vector.shape_cast %2 : vector<1x16x32xbf16> to vector<16x32xbf16>
    %4 = arith.extf %3 : vector<16x32xbf16> to vector<16x32xf32>
    %5 = vector.extract_strided_slice %1 {offsets = [0, 0], sizes = [1, 32], strides = [1, 1]} : vector<2x32xf32> to vector<1x32xf32>
    %6 = vector.broadcast %5 : vector<1x32xf32> to vector<16x32xf32>
    %7 = arith.mulf %4, %6 : vector<16x32xf32>
    %8 = vector.extract_strided_slice %1 {offsets = [1, 0], sizes = [1, 32], strides = [1, 1]} : vector<2x32xf32> to vector<1x32xf32>
    %9 = vector.broadcast %8 : vector<1x32xf32> to vector<16x32xf32>
    %10 = arith.addf %7, %9 : vector<16x32xf32>
    %c0_5 = arith.constant 0 : index
    %c0_6 = arith.constant 0 : index
    %c0_7 = arith.constant 0 : index
    %11 = vector.load %arg4[%c0_5, %c0_6, %c0_7] : memref<1x16x32xbf16, #tpu.memory_space<vmem>>, vector<1x16x32xbf16>
    %12 = vector.shape_cast %11 : vector<1x16x32xbf16> to vector<16x32xbf16>
    %13 = arith.extf %12 : vector<16x32xbf16> to vector<16x32xf32>
    %14 = arith.addf %10, %13 : vector<16x32xf32>
    %15 = arith.truncf %14 : vector<16x32xf32> to vector<16x32xbf16>
    %c0_8 = arith.constant 0 : index
    %c0_9 = arith.constant 0 : index
    %c0_10 = arith.constant 0 : index
    %16 = vector.load %arg5[%c0_8, %c0_9, %c0_10] : memref<1x16x32xbf16, #tpu.memory_space<vmem>>, vector<1x16x32xbf16>
    %17 = vector.shape_cast %16 : vector<1x16x32xbf16> to vector<16x32xbf16>
    %18 = vector.shape_cast %15 : vector<16x32xbf16> to vector<1x16x32xbf16>
    tpu.vector_store %arg5[%c0_8, %c0_9, %c0_10], %18 {strides = array<i32>} : memref<1x16x32xbf16, #tpu.memory_space<vmem>>, vector<1x16x32xbf16>,
    %cst = arith.constant dense<0.000000e+00> : vector<32xf32>
    %19 = vector.multi_reduction <add>, %14, %cst [0] : vector<16x32xf32> to vector<32xf32>
    %20 = vector.shape_cast %19 : vector<32xf32> to vector<1x32xf32>
    %21 = arith.mulf %14, %14 : vector<16x32xf32>
    %cst_11 = arith.constant dense<0.000000e+00> : vector<32xf32>
    %22 = vector.multi_reduction <add>, %21, %cst_11 [0] : vector<16x32xf32> to vector<32xf32>
    %23 = vector.shape_cast %22 : vector<32xf32> to vector<1x32xf32>
    %24 = tpu.concatenate %20, %23 in 0 : vector<1x32xf32>, vector<1x32xf32> -> vector<2x32xf32>
    %c0_12 = arith.constant 0 : index
    %c0_13 = arith.constant 0 : index
    %c0_14 = arith.constant 0 : index
    %c0_15 = arith.constant 0 : index
    %25 = vector.load %arg6[%c0_12, %c0_13, %c0_14, %c0_15] : memref<1x1x2x32xf32, #tpu.memory_space<vmem>>, vector<1x1x2x32xf32>
    %26 = vector.shape_cast %25 : vector<1x1x2x32xf32> to vector<2x32xf32>
    %27 = vector.shape_cast %24 : vector<2x32xf32> to vector<1x1x2x32xf32>
    tpu.vector_store %arg6[%c0_12, %c0_13, %c0_14, %c0_15], %27 {strides = array<i32>} : memref<1x1x2x32xf32, #tpu.memory_space<vmem>>, vector<1x1x2x32xf32>,
    return
  }
  func.func @transform_0(%arg0: i32, %arg1: i32) -> (i32, i32, i32) {
    %c0_i32 = arith.constant 0 : i32
    %c0_i32_0 = arith.constant 0 : i32
    return %arg0, %arg1, %c0_i32 : i32, i32, i32
  }
  func.func @transform_1(%arg0: i32, %arg1: i32) -> (i32, i32, i32) {
    %c0_i32 = arith.constant 0 : i32
    %c0_i32_0 = arith.constant 0 : i32
    %c0_i32_1 = arith.constant 0 : i32
    return %arg0, %c0_i32, %c0_i32_0 : i32, i32, i32
  }
  func.func @transform_2(%arg0: i32, %arg1: i32) -> (i32, i32, i32) {
    %c0_i32 = arith.constant 0 : i32
    %c0_i32_0 = arith.constant 0 : i32
    return %arg0, %arg1, %c0_i32 : i32, i32, i32
  }
  func.func @transform_3(%arg0: i32, %arg1: i32) -> (i32, i32, i32) {
    %c0_i32 = arith.constant 0 : i32
    %c0_i32_0 = arith.constant 0 : i32
    return %arg0, %arg1, %c0_i32 : i32, i32, i32
  }
  func.func @transform_4(%arg0: i32, %arg1: i32) -> (i32, i32, i32, i32) {
    %c0_i32 = arith.constant 0 : i32
    %c0_i32_0 = arith.constant 0 : i32
    %c0_i32_1 = arith.constant 0 : i32
    return %arg0, %arg1, %c0_i32, %c0_i32_0 : i32, i32, i32, i32
  }
}

module attributes {stable_mosaic.version = 11 : i64} {
  func.func @_tail_kernel(%arg0: i32, %arg1: i32, %arg2: memref<1x16x32xbf16, #tpu.memory_space<vmem>>, %arg3: memref<1x8x32xbf16, #tpu.memory_space<vmem>>, %arg4: memref<1x8x32xbf16, #tpu.memory_space<vmem>>, %arg5: memref<1x2x32xf32, #tpu.memory_space<vmem>>, %arg6: memref<3x32x32xbf16, #tpu.memory_space<vmem>>, %arg7: memref<1x32xf32, #tpu.memory_space<vmem>>, %arg8: memref<3x32x32xbf16, #tpu.memory_space<vmem>>, %arg9: memref<1x32xf32, #tpu.memory_space<vmem>>, %arg10: memref<32x128xbf16, #tpu.memory_space<vmem>>, %arg11: memref<1x128xf32, #tpu.memory_space<vmem>>, %arg12: memref<1x16x128xf32, #tpu.memory_space<vmem>>) attributes {dimension_semantics = [#tpu.dimension_semantics<parallel>, #tpu.dimension_semantics<parallel>], iteration_bounds = array<i64: 2, 1>, scalar_prefetch = 0 : i64, scratch_operands = 0 : i64, tpu.core_type = #tpu.core_type<tc>, window_params = [{transform_indices = @transform_0, window_bounds = array<i64: 1, 16, 32>}, {transform_indices = @transform_1, window_bounds = array<i64: 1, 8, 32>}, {transform_indices = @transform_2, window_bounds = array<i64: 1, 8, 32>}, {transform_indices = @transform_3, window_bounds = array<i64: 1, 2, 32>}, {pipeline_mode = #tpu.pipeline_mode<synchronous>, transform_indices = @transform_4, window_bounds = array<i64: 3, 32, 32>}, {pipeline_mode = #tpu.pipeline_mode<synchronous>, transform_indices = @transform_5, window_bounds = array<i64: 1, 32>}, {pipeline_mode = #tpu.pipeline_mode<synchronous>, transform_indices = @transform_6, window_bounds = array<i64: 3, 32, 32>}, {pipeline_mode = #tpu.pipeline_mode<synchronous>, transform_indices = @transform_7, window_bounds = array<i64: 1, 32>}, {pipeline_mode = #tpu.pipeline_mode<synchronous>, transform_indices = @transform_8, window_bounds = array<i64: 32, 128>}, {pipeline_mode = #tpu.pipeline_mode<synchronous>, transform_indices = @transform_9, window_bounds = array<i64: 1, 128>}, {transform_indices = @transform_10, window_bounds = array<i64: 1, 16, 128>}]} {
    %c0 = arith.constant 0 : index
    %c0_0 = arith.constant 0 : index
    %c0_1 = arith.constant 0 : index
    %0 = vector.load %arg3[%c0, %c0_0, %c0_1] : memref<1x8x32xbf16, #tpu.memory_space<vmem>>, vector<1x8x32xbf16>
    %1 = vector.shape_cast %0 : vector<1x8x32xbf16> to vector<8x32xbf16>
    %c0_2 = arith.constant 0 : index
    %c0_3 = arith.constant 0 : index
    %c0_4 = arith.constant 0 : index
    %2 = vector.load %arg2[%c0_2, %c0_3, %c0_4] : memref<1x16x32xbf16, #tpu.memory_space<vmem>>, vector<1x16x32xbf16>
    %3 = vector.shape_cast %2 : vector<1x16x32xbf16> to vector<16x32xbf16>
    %c0_5 = arith.constant 0 : index
    %c0_6 = arith.constant 0 : index
    %c0_7 = arith.constant 0 : index
    %4 = vector.load %arg4[%c0_5, %c0_6, %c0_7] : memref<1x8x32xbf16, #tpu.memory_space<vmem>>, vector<1x8x32xbf16>
    %5 = vector.shape_cast %4 : vector<1x8x32xbf16> to vector<8x32xbf16>
    %6 = tpu.concatenate %1, %3, %5 in 0 : vector<8x32xbf16>, vector<16x32xbf16>, vector<8x32xbf16> -> vector<32x32xbf16>
    %7 = arith.extf %6 : vector<32x32xbf16> to vector<32x32xf32>
    %c0_8 = arith.constant 0 : index
    %c0_9 = arith.constant 0 : index
    %c0_10 = arith.constant 0 : index
    %8 = vector.load %arg5[%c0_8, %c0_9, %c0_10] : memref<1x2x32xf32, #tpu.memory_space<vmem>>, vector<1x2x32xf32>
    %9 = vector.shape_cast %8 : vector<1x2x32xf32> to vector<2x32xf32>
    %10 = vector.extract_strided_slice %9 {offsets = [0, 0], sizes = [1, 32], strides = [1, 1]} : vector<2x32xf32> to vector<1x32xf32>
    %11 = vector.broadcast %10 : vector<1x32xf32> to vector<32x32xf32>
    %12 = arith.mulf %7, %11 : vector<32x32xf32>
    %13 = vector.extract_strided_slice %9 {offsets = [1, 0], sizes = [1, 32], strides = [1, 1]} : vector<2x32xf32> to vector<1x32xf32>
    %14 = vector.broadcast %13 : vector<1x32xf32> to vector<32x32xf32>
    %15 = arith.addf %12, %14 : vector<32x32xf32>
    %c16_i32 = arith.constant 16 : i32
    %16 = arith.muli %arg1, %c16_i32 : i32
    %c8_i32 = arith.constant 8 : i32
    %17 = arith.subi %16, %c8_i32 : i32
    %18 = tpu.iota {dimensions = array<i32: 0>} : vector<32x1xi32>
    %19 = vector.broadcast %17 : i32 to vector<32x1xi32>
    %20 = arith.addi %19, %18 : vector<32x1xi32>
    %c0_i32 = arith.constant 0 : i32
    %21 = vector.broadcast %c0_i32 : i32 to vector<32x1xi32>
    %22 = arith.cmpi sge, %20, %21 : vector<32x1xi32>
    %c16_i32_11 = arith.constant 16 : i32
    %23 = vector.broadcast %c16_i32_11 : i32 to vector<32x1xi32>
    %24 = arith.cmpi slt, %20, %23 : vector<32x1xi32>
    %25 = arith.andi %22, %24 : vector<32x1xi1>
    %cst = arith.constant 0.000000e+00 : f32
    %26 = vector.shape_cast %25 : vector<32x1xi1> to vector<32x1xi1>
    %27 = vector.broadcast %26 : vector<32x1xi1> to vector<32x32xi1>
    %28 = vector.broadcast %cst : f32 to vector<32x32xf32>
    %29 = arith.select %27, %15, %28 : vector<32x32xi1>, vector<32x32xf32>
    %30 = vector.extract_strided_slice %29 {offsets = [6, 0], sizes = [20, 32], strides = [1, 1]} : vector<32x32xf32> to vector<20x32xf32>
    %31 = arith.mulf %30, %30 : vector<20x32xf32>
    %32 = arith.mulf %30, %31 : vector<20x32xf32>
    %cst_12 = arith.constant 4.471500e-02 : f32
    %33 = vector.broadcast %cst_12 : f32 to vector<20x32xf32>
    %34 = arith.mulf %33, %32 : vector<20x32xf32>
    %35 = arith.addf %30, %34 : vector<20x32xf32>
    %cst_13 = arith.constant 0.797884583 : f32
    %36 = vector.broadcast %cst_13 : f32 to vector<20x32xf32>
    %37 = arith.mulf %36, %35 : vector<20x32xf32>
    %38 = math.tanh %37 : vector<20x32xf32>
    %cst_14 = arith.constant 1.000000e+00 : f32
    %39 = vector.broadcast %cst_14 : f32 to vector<20x32xf32>
    %40 = arith.addf %39, %38 : vector<20x32xf32>
    %cst_15 = arith.constant 5.000000e-01 : f32
    %41 = vector.broadcast %cst_15 : f32 to vector<20x32xf32>
    %42 = arith.mulf %41, %40 : vector<20x32xf32>
    %43 = arith.mulf %30, %42 : vector<20x32xf32>
    %44 = arith.truncf %43 : vector<20x32xf32> to vector<20x32xbf16>
    %45 = vector.extract_strided_slice %44 {offsets = [0, 0], sizes = [18, 32], strides = [1, 1]} : vector<20x32xbf16> to vector<18x32xbf16>
    %c0_16 = arith.constant 0 : index
    %c0_17 = arith.constant 0 : index
    %c0_18 = arith.constant 0 : index
    %46 = vector.load %arg6[%c0_16, %c0_17, %c0_18] : memref<3x32x32xbf16, #tpu.memory_space<vmem>>, vector<1x32x32xbf16>
    %47 = vector.shape_cast %46 : vector<1x32x32xbf16> to vector<32x32xbf16>
    %cst_19 = arith.constant dense<0.000000e+00> : vector<18x32xf32>
    %48 = tpu.matmul %45, %47, %cst_19 {dimension_numbers = #tpu.dot_dimension_numbers<[1], [0], [0], [1], [0, 0, 1, 1], [], []>} : vector<18x32xbf16>, vector<32x32xbf16>, vector<18x32xf32> -> vector<18x32xf32>
    %49 = vector.extract_strided_slice %44 {offsets = [1, 0], sizes = [18, 32], strides = [1, 1]} : vector<20x32xbf16> to vector<18x32xbf16>
    %c1 = arith.constant 1 : index
    %c0_20 = arith.constant 0 : index
    %c0_21 = arith.constant 0 : index
    %50 = vector.load %arg6[%c1, %c0_20, %c0_21] : memref<3x32x32xbf16, #tpu.memory_space<vmem>>, vector<1x32x32xbf16>
    %51 = vector.shape_cast %50 : vector<1x32x32xbf16> to vector<32x32xbf16>
    %cst_22 = arith.constant dense<0.000000e+00> : vector<18x32xf32>
    %52 = tpu.matmul %49, %51, %cst_22 {dimension_numbers = #tpu.dot_dimension_numbers<[1], [0], [0], [1], [0, 0, 1, 1], [], []>} : vector<18x32xbf16>, vector<32x32xbf16>, vector<18x32xf32> -> vector<18x32xf32>
    %53 = arith.addf %48, %52 : vector<18x32xf32>
    %54 = vector.extract_strided_slice %44 {offsets = [2, 0], sizes = [18, 32], strides = [1, 1]} : vector<20x32xbf16> to vector<18x32xbf16>
    %c2 = arith.constant 2 : index
    %c0_23 = arith.constant 0 : index
    %c0_24 = arith.constant 0 : index
    %55 = vector.load %arg6[%c2, %c0_23, %c0_24] : memref<3x32x32xbf16, #tpu.memory_space<vmem>>, vector<1x32x32xbf16>
    %56 = vector.shape_cast %55 : vector<1x32x32xbf16> to vector<32x32xbf16>
    %cst_25 = arith.constant dense<0.000000e+00> : vector<18x32xf32>
    %57 = tpu.matmul %54, %56, %cst_25 {dimension_numbers = #tpu.dot_dimension_numbers<[1], [0], [0], [1], [0, 0, 1, 1], [], []>} : vector<18x32xbf16>, vector<32x32xbf16>, vector<18x32xf32> -> vector<18x32xf32>
    %58 = arith.addf %53, %57 : vector<18x32xf32>
    %c0_26 = arith.constant 0 : index
    %c0_27 = arith.constant 0 : index
    %59 = vector.load %arg7[%c0_26, %c0_27] : memref<1x32xf32, #tpu.memory_space<vmem>>, vector<1x32xf32>
    %60 = vector.broadcast %59 : vector<1x32xf32> to vector<18x32xf32>
    %61 = arith.addf %58, %60 : vector<18x32xf32>
    %62 = arith.mulf %61, %61 : vector<18x32xf32>
    %63 = arith.mulf %61, %62 : vector<18x32xf32>
    %cst_28 = arith.constant 4.471500e-02 : f32
    %64 = vector.broadcast %cst_28 : f32 to vector<18x32xf32>
    %65 = arith.mulf %64, %63 : vector<18x32xf32>
    %66 = arith.addf %61, %65 : vector<18x32xf32>
    %cst_29 = arith.constant 0.797884583 : f32
    %67 = vector.broadcast %cst_29 : f32 to vector<18x32xf32>
    %68 = arith.mulf %67, %66 : vector<18x32xf32>
    %69 = math.tanh %68 : vector<18x32xf32>
    %cst_30 = arith.constant 1.000000e+00 : f32
    %70 = vector.broadcast %cst_30 : f32 to vector<18x32xf32>
    %71 = arith.addf %70, %69 : vector<18x32xf32>
    %cst_31 = arith.constant 5.000000e-01 : f32
    %72 = vector.broadcast %cst_31 : f32 to vector<18x32xf32>
    %73 = arith.mulf %72, %71 : vector<18x32xf32>
    %74 = arith.mulf %61, %73 : vector<18x32xf32>
    %c16_i32_32 = arith.constant 16 : i32
    %75 = arith.muli %arg1, %c16_i32_32 : i32
    %c1_i32 = arith.constant 1 : i32
    %76 = arith.subi %75, %c1_i32 : i32
    %77 = tpu.iota {dimensions = array<i32: 0>} : vector<18x1xi32>
    %78 = vector.broadcast %76 : i32 to vector<18x1xi32>
    %79 = arith.addi %78, %77 : vector<18x1xi32>
    %c0_i32_33 = arith.constant 0 : i32
    %80 = vector.broadcast %c0_i32_33 : i32 to vector<18x1xi32>
    %81 = arith.cmpi sge, %79, %80 : vector<18x1xi32>
    %c16_i32_34 = arith.constant 16 : i32
    %82 = vector.broadcast %c16_i32_34 : i32 to vector<18x1xi32>
    %83 = arith.cmpi slt, %79, %82 : vector<18x1xi32>
    %84 = arith.andi %81, %83 : vector<18x1xi1>
    %cst_35 = arith.constant 0.000000e+00 : f32
    %85 = vector.shape_cast %84 : vector<18x1xi1> to vector<18x1xi1>
    %86 = vector.broadcast %85 : vector<18x1xi1> to vector<18x32xi1>
    %87 = vector.broadcast %cst_35 : f32 to vector<18x32xf32>
    %88 = arith.select %86, %74, %87 : vector<18x32xi1>, vector<18x32xf32>
    %89 = arith.truncf %88 : vector<18x32xf32> to vector<18x32xbf16>
    %90 = vector.extract_strided_slice %89 {offsets = [0, 0], sizes = [16, 32], strides = [1, 1]} : vector<18x32xbf16> to vector<16x32xbf16>
    %c0_36 = arith.constant 0 : index
    %c0_37 = arith.constant 0 : index
    %c0_38 = arith.constant 0 : index
    %91 = vector.load %arg8[%c0_36, %c0_37, %c0_38] : memref<3x32x32xbf16, #tpu.memory_space<vmem>>, vector<1x32x32xbf16>
    %92 = vector.shape_cast %91 : vector<1x32x32xbf16> to vector<32x32xbf16>
    %cst_39 = arith.constant dense<0.000000e+00> : vector<16x32xf32>
    %93 = tpu.matmul %90, %92, %cst_39 {dimension_numbers = #tpu.dot_dimension_numbers<[1], [0], [0], [1], [0, 0, 1, 1], [], []>} : vector<16x32xbf16>, vector<32x32xbf16>, vector<16x32xf32> -> vector<16x32xf32>
    %94 = vector.extract_strided_slice %89 {offsets = [1, 0], sizes = [16, 32], strides = [1, 1]} : vector<18x32xbf16> to vector<16x32xbf16>
    %c1_40 = arith.constant 1 : index
    %c0_41 = arith.constant 0 : index
    %c0_42 = arith.constant 0 : index
    %95 = vector.load %arg8[%c1_40, %c0_41, %c0_42] : memref<3x32x32xbf16, #tpu.memory_space<vmem>>, vector<1x32x32xbf16>
    %96 = vector.shape_cast %95 : vector<1x32x32xbf16> to vector<32x32xbf16>
    %cst_43 = arith.constant dense<0.000000e+00> : vector<16x32xf32>
    %97 = tpu.matmul %94, %96, %cst_43 {dimension_numbers = #tpu.dot_dimension_numbers<[1], [0], [0], [1], [0, 0, 1, 1], [], []>} : vector<16x32xbf16>, vector<32x32xbf16>, vector<16x32xf32> -> vector<16x32xf32>
    %98 = arith.addf %93, %97 : vector<16x32xf32>
    %99 = vector.extract_strided_slice %89 {offsets = [2, 0], sizes = [16, 32], strides = [1, 1]} : vector<18x32xbf16> to vector<16x32xbf16>
    %c2_44 = arith.constant 2 : index
    %c0_45 = arith.constant 0 : index
    %c0_46 = arith.constant 0 : index
    %100 = vector.load %arg8[%c2_44, %c0_45, %c0_46] : memref<3x32x32xbf16, #tpu.memory_space<vmem>>, vector<1x32x32xbf16>
    %101 = vector.shape_cast %100 : vector<1x32x32xbf16> to vector<32x32xbf16>
    %cst_47 = arith.constant dense<0.000000e+00> : vector<16x32xf32>
    %102 = tpu.matmul %99, %101, %cst_47 {dimension_numbers = #tpu.dot_dimension_numbers<[1], [0], [0], [1], [0, 0, 1, 1], [], []>} : vector<16x32xbf16>, vector<32x32xbf16>, vector<16x32xf32> -> vector<16x32xf32>
    %103 = arith.addf %98, %102 : vector<16x32xf32>
    %c0_48 = arith.constant 0 : index
    %c0_49 = arith.constant 0 : index
    %104 = vector.load %arg9[%c0_48, %c0_49] : memref<1x32xf32, #tpu.memory_space<vmem>>, vector<1x32xf32>
    %105 = vector.broadcast %104 : vector<1x32xf32> to vector<16x32xf32>
    %106 = arith.addf %103, %105 : vector<16x32xf32>
    %107 = arith.truncf %106 : vector<16x32xf32> to vector<16x32xbf16>
    %c0_50 = arith.constant 0 : index
    %c0_51 = arith.constant 0 : index
    %108 = vector.load %arg10[%c0_50, %c0_51] : memref<32x128xbf16, #tpu.memory_space<vmem>>, vector<32x128xbf16>
    %cst_52 = arith.constant dense<0.000000e+00> : vector<16x128xf32>
    %109 = tpu.matmul %107, %108, %cst_52 {dimension_numbers = #tpu.dot_dimension_numbers<[1], [0], [0], [1], [0, 0, 1, 1], [], []>} : vector<16x32xbf16>, vector<32x128xbf16>, vector<16x128xf32> -> vector<16x128xf32>
    %c0_53 = arith.constant 0 : index
    %c0_54 = arith.constant 0 : index
    %110 = vector.load %arg11[%c0_53, %c0_54] : memref<1x128xf32, #tpu.memory_space<vmem>>, vector<1x128xf32>
    %111 = vector.broadcast %110 : vector<1x128xf32> to vector<16x128xf32>
    %112 = arith.addf %109, %111 : vector<16x128xf32>
    %c0_55 = arith.constant 0 : index
    %c0_56 = arith.constant 0 : index
    %c0_57 = arith.constant 0 : index
    %113 = vector.load %arg12[%c0_55, %c0_56, %c0_57] : memref<1x16x128xf32, #tpu.memory_space<vmem>>, vector<1x16x128xf32>
    %114 = vector.shape_cast %113 : vector<1x16x128xf32> to vector<16x128xf32>
    %115 = vector.shape_cast %112 : vector<16x128xf32> to vector<1x16x128xf32>
    tpu.vector_store %arg12[%c0_55, %c0_56, %c0_57], %115 {strides = array<i32>} : memref<1x16x128xf32, #tpu.memory_space<vmem>>, vector<1x16x128xf32>,
    return
  }
  func.func @transform_0(%arg0: i32, %arg1: i32) -> (i32, i32, i32) {
    %c0_i32 = arith.constant 0 : i32
    %c0_i32_0 = arith.constant 0 : i32
    return %arg0, %arg1, %c0_i32 : i32, i32, i32
  }
  func.func @transform_1(%arg0: i32, %arg1: i32) -> (i32, i32, i32) {
    %c2_i32 = arith.constant 2 : i32
    %0 = arith.muli %arg1, %c2_i32 : i32
    %c1_i32 = arith.constant 1 : i32
    %1 = arith.subi %0, %c1_i32 : i32
    %c0_i32 = arith.constant 0 : i32
    %2 = arith.maxsi %1, %c0_i32 : i32
    %c0_i32_0 = arith.constant 0 : i32
    %c0_i32_1 = arith.constant 0 : i32
    return %arg0, %2, %c0_i32_0 : i32, i32, i32
  }
  func.func @transform_2(%arg0: i32, %arg1: i32) -> (i32, i32, i32) {
    %c1_i32 = arith.constant 1 : i32
    %0 = arith.addi %arg1, %c1_i32 : i32
    %c2_i32 = arith.constant 2 : i32
    %1 = arith.muli %0, %c2_i32 : i32
    %c1_i32_0 = arith.constant 1 : i32
    %2 = arith.minsi %1, %c1_i32_0 : i32
    %c0_i32 = arith.constant 0 : i32
    %c0_i32_1 = arith.constant 0 : i32
    return %arg0, %2, %c0_i32 : i32, i32, i32
  }
  func.func @transform_3(%arg0: i32, %arg1: i32) -> (i32, i32, i32) {
    %c0_i32 = arith.constant 0 : i32
    %c0_i32_0 = arith.constant 0 : i32
    %c0_i32_1 = arith.constant 0 : i32
    return %arg0, %c0_i32, %c0_i32_0 : i32, i32, i32
  }
  func.func @transform_4(%arg0: i32, %arg1: i32) -> (i32, i32, i32) {
    %c0_i32 = arith.constant 0 : i32
    %c0_i32_0 = arith.constant 0 : i32
    %c0_i32_1 = arith.constant 0 : i32
    %c0_i32_2 = arith.constant 0 : i32
    return %c0_i32, %c0_i32_0, %c0_i32_1 : i32, i32, i32
  }
  func.func @transform_5(%arg0: i32, %arg1: i32) -> (i32, i32) {
    %c0_i32 = arith.constant 0 : i32
    %c0_i32_0 = arith.constant 0 : i32
    %c0_i32_1 = arith.constant 0 : i32
    return %c0_i32, %c0_i32_0 : i32, i32
  }
  func.func @transform_6(%arg0: i32, %arg1: i32) -> (i32, i32, i32) {
    %c0_i32 = arith.constant 0 : i32
    %c0_i32_0 = arith.constant 0 : i32
    %c0_i32_1 = arith.constant 0 : i32
    %c0_i32_2 = arith.constant 0 : i32
    return %c0_i32, %c0_i32_0, %c0_i32_1 : i32, i32, i32
  }
  func.func @transform_7(%arg0: i32, %arg1: i32) -> (i32, i32) {
    %c0_i32 = arith.constant 0 : i32
    %c0_i32_0 = arith.constant 0 : i32
    %c0_i32_1 = arith.constant 0 : i32
    return %c0_i32, %c0_i32_0 : i32, i32
  }
  func.func @transform_8(%arg0: i32, %arg1: i32) -> (i32, i32) {
    %c0_i32 = arith.constant 0 : i32
    %c0_i32_0 = arith.constant 0 : i32
    %c0_i32_1 = arith.constant 0 : i32
    return %c0_i32, %c0_i32_0 : i32, i32
  }
  func.func @transform_9(%arg0: i32, %arg1: i32) -> (i32, i32) {
    %c0_i32 = arith.constant 0 : i32
    %c0_i32_0 = arith.constant 0 : i32
    %c0_i32_1 = arith.constant 0 : i32
    return %c0_i32, %c0_i32_0 : i32, i32
  }
  func.func @transform_10(%arg0: i32, %arg1: i32) -> (i32, i32, i32) {
    %c0_i32 = arith.constant 0 : i32
    %c0_i32_0 = arith.constant 0 : i32
    return %arg0, %arg1, %c0_i32 : i32, i32, i32
  }
}

</mosaic_0001>

<bundles_post_ra>
// kernel: mul.7
= control target key start
LH: loop header
LB: loop body
LE: loop exit
PB: predicated region body
PF: predicated region fallthrough
CT: control target
= control target key end

     0   :  { %s34_s0 = inlined_call_operand.vmem [shape: f32[2,8], index: 0, kind: input, shape index: {}]   ;;  %s35_s1 = inlined_call_operand.vmem [shape: f32[2,8], index: 1, kind: input, shape index: {}]   ;;  %s36_s2 = inlined_call_operand.vmem [shape: f32[2,8], index: 2, kind: output, shape index: {}]  }
   0x1   :  { %v3_v0 = vld [vmem:[%s34_s0] sm:$0x3] }
   0x2   :  { %v4_v1 = vld [vmem:[%s35_s1] sm:$0x3] }
   0x3   :  { %v7_v2 = vmul.f32 %v4_v1, %v3_v0 }
   0x5   :  { %9 = vst [vmem:[%s36_s2] sm:$0x3] %v7_v2 }

// kernel: model_forward.6
= control target key start
LH: loop header
LB: loop body
LE: loop exit
PB: predicated region body
PF: predicated region fallthrough
CT: control target
= control target key end

     0   :  { %s1343_s24 = smov 0   ;;  %s1345_s25 = smov 0   ;;  %s1466_s0 = inlined_call_operand.vmem [shape: bf16[2,16,32], index: 0, kind: input, shape index: {}, may-alias: {0,1,2}]   ;;  %s1467_s1 = inlined_call_operand.vmem [shape: bf16[2,16,32], index: 1, kind: input, shape index: {}, may-alias: {0,1,2}]   ;;  %s1468_s2 = inlined_call_operand.vmem [shape: bf16[2,16,32], index: 2, kind: input, shape index: {}, may-alias: {0,1,2}]   ;;  %s1469_s3 = inlined_call_operand.vmem [shape: bf16[3,32,64], index: 3, kind: input, shape index: {}]   ;;  %s1470_s4 = inlined_call_operand.vmem [shape: bf16[32,32], index: 4, kind: input, shape index: {}]   ;;  %s1471_s5 = inlined_call_operand.vmem [shape: bf16[2,16,32], index: 5, kind: output, shape index: {0}]   ;;  %s1472_s6 = inlined_call_operand.vmem [shape: bf16[2,16,32], index: 6, kind: output, shape index: {1}]   ;;  %s1473_s7 = inlined_call_operand.vmem [shape: f32[2,1,2,32], index: 7, kind: output, shape index: {2}]  }
   0x1   :  { %s1347_s26 = smov 0  }
   0x2 LB: > { %s30_s27 = sadd.s32 1, %s1292_s25  ;;  %p1122_p0 = scmp.ge.s32.totalorder %s1296_s26, 1  ;;  %s1296_s26 = sphi %s1347_s26, %s18_s26   ;;  %s1292_s25 = sphi %s1345_s25, %s1475_s25   ;;  %s1288_s24 = sphi %s1343_s24, %s1474_s24  }
   0x3   : > { %p32_p1 = scmp.ge.s32.totalorder %s30_s27, 2  ;;  %p329_p2 = scmp.lt.s32.totalorder %s1296_s26, 3 }
   0x5   : > { %s1477_s27 = smov (%p32_p1, %s30_s27), 0  ;;  %p330_p3 = pnand %p1122_p0, %p329_p2 }
   0x6   : > { %p410_p4 = scmp.lt.s32.totalorder (!%p330_p3), %s1288_s24, 1  ;;  %s1302_s14 = smov (!%p330_p3), 96  }
   0x7   : > { %333 = sbr.rel (%p330_p3) target bundleno = 601 (0x259), region = 40 }
   0xc   : > { %v1251_v0 = vld [vmem:[%s1469_s3 + $0x18] sm:$0xff]   ;;  %v1298_v1 = vmov 0.0   ;;  %v1252_v2 = vld [vmem:[%s1469_s3 + $0x10] sm:$0xff]   ;;  %v1253_v3 = vld [vmem:[%s1469_s3 + $0x8] sm:$0xff]   ;;  %vm1299_vm0 = vmmov 0   ;;  %s1479_s24 = smov (!%p410_p4, %s1288_s24), 1 }
   0xd   : > { %1190 = vmatprep.subr.bf16.mxu0 %v1298_v1  ;;  %1198 = vmatprep.subr.bf16.mxu1 %v1298_v1  ;;  %vm535_vm1 = vmpackc.low %vm1299_vm0, %vm1299_vm0  ;;  %vm1300_vm2 = vmmov 1   ;;  %v1301_v4 = vmov 0   ;;  %v1258_v7 = vld [vmem:[%s1469_s3] sm:$0xff]   ;;  %s1386_s13 = sshll.u32 %s1479_s24, 3  ;;  %vm494_vm4 = vcmask 1043456   ;;  %vm580_vm7 = vcmask 261120  }
   0xe   : > { %1191 = vmatpush3.bf16.msra.mxu0 %v1251_v0  ;;  %1194 = vmatprep.mubr.msk.bf16.mxu0 %vm1299_vm0, %v1298_v1  ;;  %vm536_vm3 = vmpackc.low %vm1300_vm2, %vm1300_vm2  ;;  %v539_v5 = vsel %vm535_vm1, 65537, %v1301_v4  ;;  %s417_s16 = scalar_lea.vmem %s1466_s0, %s1386_s13  ;;  %s430_s19 = scalar_lea.vmem %s1467_s1, %s1386_s13  ;;  %v1257_v26 = vld [vmem:[%s1469_s3 + $0x28] sm:$0xff]   ;;  %vm625_vm8 = vsmask.f32 4352  ;;  %v1259_v38 = vld [vmem:[%s1469_s3 + $0x20] sm:$0xff]   ;;  %vm867_vm10 = vcmask 257024  }
   0xf   : > { %1192 = vmatprep.subr.bf16.mxu0 %v1298_v1  ;;  %1202 = vmatprep.mubr.msk.bf16.mxu1 %vm1299_vm0, %v1298_v1  ;;  %v540_v6 = vsel %vm536_vm3, 65537, %v1301_v4  ;;  %s1170_s20 = sadd.s32 4, %s1386_s13  ;;  %v481_v10 = vld [vmem:[%s430_s19] sm:$0xf]  ;;  %v1403_v12 = vld [vmem:[%s417_s16 + $0x4] sm:$0xf]  ;;  %s459_s17 = scalar_lea.vmem %s1471_s5, %s1386_s13 }
  0x10   : > { %1199 = vmatpush3.bf16.msra.mxu1 %v1253_v3  ;;  %v1137_v8 = vcombine.low %v539_v5, %v540_v6  ;;  %v1138_v9 = vcombine.low %v540_v6, %v539_v5  ;;  %v1398_v11 = vld [vmem:[%s417_s16] sm:$0xf]  ;;  %s446_s23 = scalar_lea.vmem %s1468_s2, %s1170_s20  ;;  %v1135_v14 = vcombine.low %v1403_v12, %v1403_v12  ;;  %vm704_vm9 = vsmask.f32 3328  ;;  %v1260_v63 = vld [vmem:[%s1470_s4 + $0x8] sm:$0xff]   ;;  %s469_s20 = scalar_lea.vmem %s1472_s6, %s1386_s13 }
  0x11   : > { %1200 = vmatprep.subr.bf16.mxu1 %v1298_v1  ;;  %v1134_v13 = vcombine.low %v1398_v11, %v1398_v11  ;;  %v1256_v15 = vld [vmem:[%s446_s23] ss:$0 sps:$4 sm:$0xff]   ;;  %s1133_s13 = sshll.u32 %s1479_s24, 1  ;;  %vm900_vm11 = vcmask 1040384   ;;  %vm902_vm12 = vcmask 254976  }
  0x12   : > { %1193 = vmatpush3.bf16.msra.mxu0 %v1252_v2  ;;  %vm549_vm5 = vcmp.ne.s16.totalorder %v1137_v8, 0  ;;  %vm550_vm6 = vcmp.ne.s16.totalorder %v1138_v9, 0  ;;  %v501_v17 = vsel %vm494_vm4, %v1135_v14, %v1256_v15  ;;  %v1261_v3 = vld [vmem:[%s1470_s4] sm:$0xff]   ;;  %v855_v14 = vunpack.c.l.bf16 %v1398_v11  ;;  %s477_s23 = scalar_lea.vmem %s1473_s7, %s1133_s13 }
  0x13   : > { %1206 = vmatprep.subr.bf16.mxu0 %v1298_v1  ;;  %v497_v16 = vsel %vm494_vm4, %v481_v10, %v1134_v13  ;;  %v552_v19 = vsel %vm550_vm6, %v501_v17, 0 }
  0x14   : > { %1201 = vmatpush3.bf16.msra.mxu1 %v1258_v7  ;;  %v551_v18 = vsel %vm549_vm5, %v497_v16, 0  ;;  %v566_v23 = vrot.slane %v552_v19, 4  ;;  %v635_v24 = vshrl.u32 %v552_v19, 16  ;;  %v638_v25 = vshll.u32 %v552_v19, 16 }
  0x15   : > { %1214 = vmatprep.subr.bf16.mxu1 %v1298_v1  ;;  %v565_v20 = vrot.slane %v551_v18, 4  ;;  %v627_v21 = vshrl.u32 %v551_v18, 16  ;;  %v630_v22 = vshll.u32 %v551_v18, 16  ;;  %v856_v18 = vunpack.c.l.bf16 %v1403_v12 }
  0x16   : > { %v637_v32 = vrot.slane %v635_v24, 3  ;;  %v640_v33 = vrot.slane %v638_v25, 4  ;;  %v708_v34 = vrot.slane %v635_v24, 4  ;;  %v709_v36 = vrot.slane %v638_v25, 5 }
  0x17   : > { %v629_v27 = vrot.slane %v627_v21, 3  ;;  %v632_v28 = vrot.slane %v630_v22, 4  ;;  %v705_v29 = vrot.slane %v627_v21, 4  ;;  %v706_v30 = vrot.slane %v630_v22, 5 }
  0x18   : > { %v567_v31 = vsel %vm494_vm4, %v565_v20, %v566_v23  ;;  %v641_v37 = vor.u32 %v640_v33, %v637_v32  ;;  %v710_v40 = vor.u32 %v709_v36, %v708_v34 }
  0x19   : > { %1195 = vmatmul.mubr.msk.bf16.vlgmr.msra.gmra.mxu0 %vm580_vm7, %v567_v31  ;;  %v633_v35 = vor.u32 %v632_v28, %v629_v27  ;;  %v707_v39 = vor.u32 %v706_v30, %v705_v29 }
  0x1a   : > { %1207 = vmatpush3.bf16.msra.mxu0 %v1257_v26  ;;  %1210 = vmatprep.mubr.msk.bf16.mxu0 %vm1299_vm0, %v1298_v1 }
  0x1b   : > { %1208 = vmatprep.subr.bf16.mxu0 %v1298_v1  ;;  %v642_v41 = vsel %vm625_vm8, %v633_v35, %v641_v37  ;;  %v711_v42 = vsel %vm704_vm9, %v707_v39, %v710_v40 }
  0x1c   : > { %1203 = vmatmul.mubr.msk.bf16.vlgmr.msra.gmra.mxu1 %vm580_vm7, %v642_v41 }
  0x1d   : > { %1218 = vmatprep.mubr.msk.bf16.mxu1 %vm1299_vm0, %v1298_v1  ;;  %1215 = vmatpush3.bf16.msra.mxu1 %v1260_v63 }
  0x1e   : > { %1209 = vmatpush3.bf16.msra.mxu0 %v1259_v38  ;;  %1216 = vmatprep.subr.bf16.mxu1 %v1298_v1 }
  0x21   : > { %1211 = vmatmul.mubr.msk.bf16.vlgmr.msra.gmra.mxu0 %vm580_vm7, %v711_v42  ;;  %1217 = vmatpush3.bf16.msra.mxu1 %v1261_v3 }
  0xd9   : > { %v618_v43 = vpop.f32.mrf.mxu0 }
  0xdb   : > { %v1196_v44 = vpop.f32.mrf.mxu0 }
  0xdc   : > { %v692_v46 = vpop.f32.mrf.mxu1 }
  0xdd   : > { %v621_v45 = vpop.f32.mrf.mxu0  ;;  %v693_v49 = vadd.f32 %v692_v46, %v618_v43 }
  0xde   : > { %v1204_v48 = vpop.f32.mrf.mxu1 }
  0xdf   : > { %v1197_v47 = vpop.f32.mrf.mxu0 }
  0xe0   : > { %v695_v50 = vpop.f32.mrf.mxu1 }
  0xe1   : > { %v761_v51 = vpop.f32.mrf.mxu0  ;;  %v696_v55 = vadd.f32 %v695_v50, %v621_v45 }
  0xe2   : > { %v768_v52 = vadd.f32 %v761_v51, %v693_v49  ;;  %v1205_v53 = vpop.f32.mrf.mxu1 }
  0xe3   : > { %v1212_v54 = vpop.f32.mrf.mxu0 }
  0xe4   : > { %v1156_v56 = vmul.f32 -1.442695, %v768_v52 }
  0xe5   : > { %v764_v57 = vpop.f32.mrf.mxu0 }
  0xe6   : > { %1262 = vpow2.f32 %v1156_v56  ;;  %v769_v58 = vadd.f32 %v764_v57, %v696_v55 }
  0xe7   : > { %v1213_v59 = vpop.f32.mrf.mxu0 }
  0xe8   : > { %v1157_v60 = vmul.f32 -1.442695, %v769_v58 }
  0xea   : > { %1264 = vpow2.f32 %v1157_v60 }
  0xf3   : > { %v1263_v61 = vpop.eup %1262 }
  0xf4   : > { %v778_v62 = vadd.f32 1.0, %v1263_v61 }
  0xf6   : > { %1266 = vrcp.f32 %v778_v62 }
  0xf7   : > { %v1265_v0 = vpop.eup %1264 }
  0xf8   : > { %v779_v2 = vadd.f32 1.0, %v1265_v0 }
  0xfa   : > { %1268 = vrcp.f32 %v779_v2 }
  0xfb   : > { %1270 = vtanh.f32 %v768_v52 }
  0xfc   : > { %1272 = vtanh.f32 %v769_v58 }
 0x103   : > { %v1267_v4 = vpop.eup %1266 }
 0x104   : > { %786 = vrot.lane.b32.xlu0 %v1267_v4, %s1302_s14 }
 0x107   : > { %v1269_v5 = vpop.eup %1268 }
 0x108   : > { %788 = vrot.lane.b32.xlu0 %v1269_v5, %s1302_s14  ;;  %v1271_v7 = vpop.eup %1270 }
 0x109   : > { %v1273_v8 = vpop.eup %1272 }
 0x176   : > { %v787_v6 = vpop.permute.xlu0 %786 }
 0x177   : > { %v792_v1 = vmul.f32 %v1271_v7, %v787_v6 }
 0x17a   : > { %v789_v9 = vpop.permute.xlu0 %788 }
 0x17b   : > { %v793_v10 = vmul.f32 %v1273_v8, %v789_v9 }
 0x17d   : > { %v794_v13 = vpack.c.bf16 %v793_v10, %v792_v1 }
 0x17f   : > { %1219 = vmatmul.mubr.msk.bf16.vlgmr.msra.gmra.mxu1 %vm580_vm7, %v794_v13 }
 0x23f   : > { %v848_v15 = vpop.f32.mrf.mxu1 }
 0x240   : > { %v857_v16 = vadd.f32 %v855_v14, %v848_v15  ;;  %v1173_v17 = vpack.c.bf16 %v848_v15, %v848_v15 }
 0x241   : > { %v1220_v19 = vpop.f32.mrf.mxu1 }
 0x242   : > { %868 = vst.msk [vmem:[%s459_s17] sm:$0xf] %vm867_vm10, %v1173_v17  ;;  %v1175_v20 = vpack.c.bf16 %v857_v16, %v857_v16  ;;  %v889_v11 = vmul.f32 %v857_v16, %v857_v16  ;;  %v880_v25 = vsel %vm580_vm7, %v857_v16, 0.0 }
 0x243   : > { %v851_v21 = vpop.f32.mrf.mxu1 }
 0x244   : > { %878 = vst.msk [vmem:[%s469_s20] sm:$0xf] %vm867_vm10, %v1175_v20  ;;  %v858_v22 = vadd.f32 %v856_v18, %v851_v21  ;;  %v1174_v23 = vpack.c.bf16 %v851_v21, %v851_v21  ;;  %v891_v29 = vsel %vm580_vm7, %v889_v11, 0.0 }
 0x245   : > { %v1221_v24 = vpop.f32.mrf.mxu1 }
 0x246   : > { %869 = vst.msk [vmem:[%s459_s17 + $0x4] sm:$0xf] %vm867_vm10, %v1174_v23  ;;  %v1176_v12 = vpack.c.bf16 %v858_v22, %v858_v22  ;;  %v881_v26 = vsel %vm580_vm7, %v858_v22, 0.0  ;;  %v890_v27 = vmul.f32 %v858_v22, %v858_v22 }
 0x247   : > { %v882_v28 = vadd.f32 %v881_v26, %v880_v25 }
 0x248   : > { %879 = vst.msk [vmem:[%s469_s20 + $0x4] sm:$0xf] %vm867_vm10, %v1176_v12  ;;  %v892_v30 = vsel %vm580_vm7, %v890_v27, 0.0 }
 0x249   : > { %v883_v31 = vrot.slane %v882_v28, 4  ;;  %v893_v32 = vadd.f32 %v892_v30, %v891_v29 }
 0x24b   : > { %v884_v33 = vadd.f32 %v883_v31, %v882_v28  ;;  %v894_v34 = vrot.slane %v893_v32, 4 }
 0x24d   : > { %v885_v35 = vrot.slane %v884_v33, 2  ;;  %v895_v36 = vadd.f32 %v894_v34, %v893_v32 }
 0x24f   : > { %v886_v37 = vadd.f32 %v885_v35, %v884_v33  ;;  %v896_v38 = vrot.slane %v895_v36, 2 }
 0x251   : > { %v887_v39 = vrot.slane %v886_v37, 1  ;;  %v897_v40 = vadd.f32 %v896_v38, %v895_v36 }
 0x253   : > { %v898_v41 = vrot.slane %v897_v40, 1  ;;  %v888_v42 = vadd.f32 %v887_v39, %v886_v37 }
 0x255   : > { %v899_v43 = vadd.f32 %v898_v41, %v897_v40 }
 0x257   : > { %v901_v44 = vsel %vm900_vm11, %v888_v42, %v899_v43 }
 0x258   : > { %903 = vst.msk [vmem:[%s477_s23] sm:$0x3] %vm902_vm12, %v901_v44 }
 0x259 PF: > { %s18_s26 = sadd.s32 1, %s1296_s26   ;;  %s1474_s24 = smov %s1292_s25 }
 0x25a   : > { %p15_p5 = scmp.ge.s32.totalorder %s18_s26, 4   ;;  %s1475_s25 = smov %s1477_s27 }
 0x25c   :  { %17 = sbr.rel (!%p15_p5) target bundleno = 2 (0x2), region = 102 }

// kernel: model_forward.5
= control target key start
LH: loop header
LB: loop body
LE: loop exit
PB: predicated region body
PF: predicated region fallthrough
CT: control target
= control target key end

     0   :  { %s965_s21 = smov 0   ;;  %s967_s22 = smov 0   ;;  %s1027_s0 = inlined_call_operand.vmem [shape: f32[2,16,4], index: 0, kind: input, shape index: {}, may-alias: {0,1,2}]   ;;  %s1028_s1 = inlined_call_operand.vmem [shape: f32[2,16,4], index: 1, kind: input, shape index: {}, may-alias: {0,1,2}]   ;;  %s1029_s2 = inlined_call_operand.vmem [shape: f32[2,16,4], index: 2, kind: input, shape index: {}, may-alias: {0,1,2}]   ;;  %s1030_s3 = inlined_call_operand.vmem [shape: f32[2,2,4], index: 3, kind: input, shape index: {}]   ;;  %s1031_s4 = inlined_call_operand.vmem [shape: bf16[3,4,32], index: 4, kind: input, shape index: {}]   ;;  %s1032_s5 = inlined_call_operand.vmem [shape: f32[1,32], index: 5, kind: input, shape index: {}]   ;;  %s1033_s6 = inlined_call_operand.vmem [shape: bf16[2,16,32], index: 6, kind: output, shape index: {}]  }
   0x1   :  { %s969_s1 = smov 0  }
   0x2 LB: > { %s28_s2 = sadd.s32 1, %s922_s22  ;;  %p827_p0 = scmp.ge.s32.totalorder %s926_s1, 1  ;;  %s926_s1 = sphi %s969_s1, %s16_s1   ;;  %s922_s22 = sphi %s967_s22, %s1035_s22   ;;  %s918_s21 = sphi %s965_s21, %s1034_s21  }
   0x3   : > { %p30_p1 = scmp.ge.s32.totalorder %s28_s2, 2  ;;  %p304_p2 = scmp.lt.s32.totalorder %s926_s1, 3 }
   0x5   : > { %s1037_s2 = smov (%p30_p1, %s28_s2), 0  ;;  %p305_p3 = pnand %p827_p0, %p304_p2 }
   0x6   : > { %p371_p4 = scmp.lt.s32.totalorder (!%p305_p3), %s918_s21, 1 }
   0x7   : > { %308 = sbr.rel (%p305_p3) target bundleno = 241 (0xf1), region = 44 }
   0xc   : > { %v837_v0 = vld [vmem:[%s1031_s4 + $0x2] sm:$0x3]  ;;  %vm499_vm0 = vcmask 1041408   ;;  %v432_v1 = vlaneseq  ;;  %v928_v2 = vmov 0.0   ;;  %vm929_vm1 = vmmov 0   ;;  %s1039_s21 = smov (!%p371_p4, %s918_s21), 1 }
   0xd   : > { %860 = vmatprep.subr.bf16.mxu0 %v928_v2  ;;  %v501_v3 = vsel %vm499_vm0, %v837_v0, 0  ;;  %862 = vmatprep.mubr.msk.bf16.mxu0 %vm929_vm1, %v928_v2  ;;  %v486_v5 = vld [vmem:[%s1031_s4] sm:$0x3]  ;;  %s847_s27 = sshll.u32 %s1039_s21, 4  ;;  %s834_s28 = sshll.u32 %s1039_s21, 1  ;;  %vm491_vm2 = vcmask 1043456  }
   0xe   : > { %861 = vmatpush3.bf16.msra.mxu0 %v501_v3  ;;  %v433_v4 = vshrl.u32 %v432_v1, 7  ;;  %866 = vmatprep.subr.bf16.mxu1 %v928_v2  ;;  %v566_v6 = vsel %vm499_vm0, %v486_v5, 0  ;;  %s378_s7 = scalar_lea.vmem %s1027_s0, %s847_s27  ;;  %s415_s10 = scalar_lea.vmem %s1030_s3, %s834_s28  ;;  %v840_v20 = vld [vmem:[%s1031_s4 + $0x4] sm:$0x3]  ;;  %vm495_vm3 = vcmask 31744   ;;  %vm685_vm6 = vcmask 257024  }
   0xf   : > { %872 = vmatprep.subr.bf16.mxu0 %v928_v2  ;;  %868 = vmatprep.mubr.msk.bf16.mxu1 %vm929_vm1, %v928_v2  ;;  %v428_v9 = vld [vmem:[%s378_s7] sm:$0xff]  ;;  %v429_v10 = vld [vmem:[%s378_s7 + $0x8] sm:$0xff]  ;;  %v623_v25 = vsel %vm499_vm0, %v840_v20, 0  ;;  %vm544_vm4 = vsmask.f32 4352  ;;  %s851_s15 = sshll.u32 %s1039_s21, 3 }
  0x10   : > { %v434_v7 = vsub.s32 0, %v433_v4  ;;  %v442_v8 = vsub.s32 1, %v433_v4  ;;  %867 = vmatpush3.bf16.msra.mxu1 %v566_v6  ;;  %v431_v11 = vld [vmem:[%s415_s10] sm:$0x3]  ;;  %vm611_vm5 = vsmask.f32 3328  ;;  %s424_s18 = scalar_lea.vmem %s1033_s6, %s851_s15 }
  0x11   : > { %v842_v51 = vld [vmem:[%s1032_s5] ss:$0 sm:$0xff] }
  0x12   : > { %v435_v12 = vrot.slane %v431_v11, %v434_v7  ;;  %v443_v13 = vrot.slane %v431_v11, %v442_v8 }
  0x14   : > { %v437_v14 = vmul.f32 %v435_v12, %v428_v9  ;;  %v438_v15 = vmul.f32 %v435_v12, %v429_v10 }
  0x16   : > { %v445_v16 = vadd.f32 %v443_v13, %v437_v14  ;;  %v446_v17 = vadd.f32 %v443_v13, %v438_v15 }
  0x18   : > { %v484_v18 = vpack.c.bf16 %v445_v16, %v928_v2  ;;  %v485_v19 = vpack.c.bf16 %v928_v2, %v446_v17 }
  0x1a   : > { %v492_v21 = vrot.slane %v484_v18, 4  ;;  %v493_v22 = vrot.slane %v485_v19, 4  ;;  %v546_v23 = vshrl.u32 %v484_v18, 16  ;;  %v549_v24 = vshll.u32 %v484_v18, 16 }
  0x1b   : > { %v554_v26 = vshrl.u32 %v485_v19, 16  ;;  %v557_v27 = vshll.u32 %v485_v19, 16 }
  0x1c   : > { %v494_v28 = vsel %vm491_vm2, %v492_v21, %v493_v22  ;;  %v548_v29 = vrot.slane %v546_v23, 3  ;;  %v551_v30 = vrot.slane %v549_v24, 4  ;;  %v612_v31 = vrot.slane %v546_v23, 4 }
  0x1d   : > { %863 = vmatmul.mubr.msk.bf16.vlgmr.msra.gmra.mxu0 %vm495_vm3, %v494_v28  ;;  %v556_v32 = vrot.slane %v554_v26, 3  ;;  %v559_v33 = vrot.slane %v557_v27, 4  ;;  %v613_v34 = vrot.slane %v549_v24, 5  ;;  %v615_v35 = vrot.slane %v554_v26, 4 }
  0x1e   : > { %873 = vmatpush3.bf16.msra.mxu0 %v623_v25  ;;  %v552_v36 = vor.u32 %v551_v30, %v548_v29  ;;  %874 = vmatprep.mubr.msk.bf16.mxu0 %vm929_vm1, %v928_v2  ;;  %v616_v37 = vrot.slane %v557_v27, 5 }
  0x1f   : > { %v560_v38 = vor.u32 %v559_v33, %v556_v32  ;;  %v614_v39 = vor.u32 %v613_v34, %v612_v31 }
  0x20   : > { %v617_v40 = vor.u32 %v616_v37, %v615_v35 }
  0x21   : > { %v561_v41 = vsel %vm544_vm4, %v552_v36, %v560_v38 }
  0x22   : > { %869 = vmatmul.mubr.msk.bf16.vlgmr.msra.gmra.mxu1 %vm495_vm3, %v561_v41  ;;  %v618_v42 = vsel %vm611_vm5, %v614_v39, %v617_v40 }
  0x25   : > { %875 = vmatmul.mubr.msk.bf16.vlgmr.msra.gmra.mxu0 %vm495_vm3, %v618_v42 }
  0xdd   : > { %v537_v43 = vpop.f32.mrf.mxu0 }
  0xdf   : > { %v864_v44 = vpop.f32.mrf.mxu0 }
  0xe1   : > { %v540_v45 = vpop.f32.mrf.mxu0 }
  0xe2   : > { %v602_v46 = vpop.f32.mrf.mxu1 }
  0xe3   : > { %v865_v47 = vpop.f32.mrf.mxu0  ;;  %v603_v48 = vadd.f32 %v602_v46, %v537_v43 }
  0xe4   : > { %v870_v49 = vpop.f32.mrf.mxu1 }
  0xe5   : > { %v659_v50 = vpop.f32.mrf.mxu0 }
  0xe6   : > { %v605_v52 = vpop.f32.mrf.mxu1  ;;  %v666_v53 = vadd.f32 %v659_v50, %v603_v48 }
  0xe7   : > { %v876_v54 = vpop.f32.mrf.mxu0  ;;  %v606_v55 = vadd.f32 %v605_v52, %v540_v45 }
  0xe8   : > { %v675_v56 = vadd.f32 %v842_v51, %v666_v53  ;;  %v871_v57 = vpop.f32.mrf.mxu1 }
  0xe9   : > { %v662_v58 = vpop.f32.mrf.mxu0 }
  0xea   : > { %v852_v59 = vpack.c.bf16 %v675_v56, %v675_v56  ;;  %v667_v60 = vadd.f32 %v662_v58, %v606_v55 }
  0xeb   : > { %v877_v61 = vpop.f32.mrf.mxu0 }
  0xec   : > { %686 = vst.msk [vmem:[%s424_s18] sm:$0xf] %vm685_vm6, %v852_v59  ;;  %v676_v62 = vadd.f32 %v842_v51, %v667_v60 }
  0xee   : > { %v853_v63 = vpack.c.bf16 %v676_v62, %v676_v62 }
  0xf0   : > { %687 = vst.msk [vmem:[%s424_s18 + $0x4] sm:$0xf] %vm685_vm6, %v853_v63 }
  0xf1 PF: > { %s16_s1 = sadd.s32 1, %s926_s1   ;;  %s1034_s21 = smov %s922_s22 }
  0xf2   : > { %p13_p5 = scmp.ge.s32.totalorder %s16_s1, 4   ;;  %s1035_s22 = smov %s1037_s2 }
  0xf4   :  { %15 = sbr.rel (!%p13_p5) target bundleno = 2 (0x2), region = 85 }

// kernel: model_forward.8
= control target key start
LH: loop header
LB: loop body
LE: loop exit
PB: predicated region body
PF: predicated region fallthrough
CT: control target
= control target key end

     0   :  { %s629_s15 = smov 0   ;;  %s631_s16 = smov 0   ;;  %s679_s0 = inlined_call_operand.vmem [shape: bf16[2,16,32], index: 0, kind: input, shape index: {}]   ;;  %s680_s1 = inlined_call_operand.vmem [shape: f32[2,2,32], index: 1, kind: input, shape index: {}]   ;;  %s681_s2 = inlined_call_operand.vmem [shape: bf16[2,16,32], index: 2, kind: input, shape index: {}]   ;;  %s682_s3 = inlined_call_operand.vmem [shape: bf16[2,16,32], index: 3, kind: output, shape index: {0}]   ;;  %s683_s4 = inlined_call_operand.vmem [shape: f32[2,1,2,32], index: 4, kind: output, shape index: {1}]  }
   0x1   :  { %s633_s17 = smov 0  }
   0x2 LB: > { %s27_s18 = sadd.s32 1, %s598_s16  ;;  %p530_p0 = scmp.ge.s32.totalorder %s602_s17, 1  ;;  %s602_s17 = sphi %s633_s17, %s15_s17   ;;  %s598_s16 = sphi %s631_s16, %s685_s16   ;;  %s594_s15 = sphi %s629_s15, %s684_s15  }
   0x3   : > { %p29_p1 = scmp.ge.s32.totalorder %s27_s18, 2  ;;  %p214_p2 = scmp.lt.s32.totalorder %s602_s17, 3 }
   0x5   : > { %s687_s18 = smov (%p29_p1, %s27_s18), 0  ;;  %p215_p3 = pnand %p530_p0, %p214_p2 }
   0x6   : > { %p269_p4 = scmp.lt.s32.totalorder (!%p215_p3), %s594_s15, 1 }
   0x7   : > { %218 = sbr.rel (%p215_p3) target bundleno = 46 (0x2e), region = 32 }
   0xc   : > { %v314_v0 = vlaneseq  ;;  %s689_s15 = smov (!%p269_p4, %s594_s15), 1  ;;  %vm343_vm0 = vcmask 261120   ;;  %vm340_vm1 = vcmask 257024   ;;  %vm364_vm2 = vcmask 1040384  }
   0xd   : > { %s543_s19 = sshll.u32 %s689_s15, 3  ;;  %s533_s20 = sshll.u32 %s689_s15, 1  ;;  %vm366_vm3 = vcmask 254976  }
   0xe   : > { %v315_v1 = vshrl.u32 %v314_v0, 7  ;;  %s276_s23 = scalar_lea.vmem %s679_s0, %s543_s19  ;;  %s281_s26 = scalar_lea.vmem %s680_s1, %s533_s20 }
   0xf   : > { %s290_s29 = scalar_lea.vmem %s681_s2, %s543_s19  ;;  %v309_v4 = vld [vmem:[%s281_s26] sm:$0x3]  ;;  %s300_s6 = scalar_lea.vmem %s682_s3, %s543_s19 }
  0x10   : > { %v316_v2 = vsub.s32 0, %v315_v1  ;;  %v322_v3 = vsub.s32 1, %v315_v1  ;;  %v549_v5 = vld [vmem:[%s276_s23] sm:$0xff]   ;;  %s308_s9 = scalar_lea.vmem %s683_s4, %s533_s20 }
  0x11   : > { %v550_v6 = vunpack.c.l.bf16 %v549_v5  ;;  %v551_v7 = vunpack.c.h.bf16 %v549_v5  ;;  %v553_v10 = vld [vmem:[%s290_s29] sm:$0xff]  }
  0x12   : > { %v317_v8 = vrot.slane %v309_v4, %v316_v2  ;;  %v323_v9 = vrot.slane %v309_v4, %v322_v3  ;;  %v554_v13 = vunpack.c.l.bf16 %v553_v10  ;;  %v555_v14 = vunpack.c.h.bf16 %v553_v10 }
  0x14   : > { %v318_v11 = vmul.f32 %v550_v6, %v317_v8  ;;  %v319_v12 = vmul.f32 %v551_v7, %v317_v8 }
  0x16   : > { %v324_v15 = vadd.f32 %v323_v9, %v318_v11  ;;  %v325_v16 = vadd.f32 %v323_v9, %v319_v12 }
  0x18   : > { %v330_v17 = vadd.f32 %v554_v13, %v324_v15  ;;  %v331_v18 = vadd.f32 %v555_v14, %v325_v16 }
  0x1a   : > { %v546_v19 = vpack.c.bf16 %v330_v17, %v330_v17  ;;  %v344_v20 = vsel %vm343_vm0, %v330_v17, 0.0  ;;  %v353_v21 = vmul.f32 %v330_v17, %v330_v17  ;;  %v547_v22 = vpack.c.bf16 %v331_v18, %v331_v18 }
  0x1b   : > { %v345_v23 = vsel %vm343_vm0, %v331_v18, 0.0  ;;  %v354_v24 = vmul.f32 %v331_v18, %v331_v18 }
  0x1c   : > { %341 = vst.msk [vmem:[%s300_s6] sm:$0xf] %vm340_vm1, %v546_v19  ;;  %342 = vst.msk [vmem:[%s300_s6 + $0x4] sm:$0xf] %vm340_vm1, %v547_v22  ;;  %v346_v25 = vadd.f32 %v345_v23, %v344_v20  ;;  %v355_v26 = vsel %vm343_vm0, %v353_v21, 0.0 }
  0x1d   : > { %v356_v27 = vsel %vm343_vm0, %v354_v24, 0.0 }
  0x1e   : > { %v347_v28 = vrot.slane %v346_v25, 4  ;;  %v357_v29 = vadd.f32 %v356_v27, %v355_v26 }
  0x20   : > { %v348_v30 = vadd.f32 %v347_v28, %v346_v25  ;;  %v358_v31 = vrot.slane %v357_v29, 4 }
  0x22   : > { %v349_v32 = vrot.slane %v348_v30, 2  ;;  %v359_v33 = vadd.f32 %v358_v31, %v357_v29 }
  0x24   : > { %v350_v34 = vadd.f32 %v349_v32, %v348_v30  ;;  %v360_v35 = vrot.slane %v359_v33, 2 }
  0x26   : > { %v351_v36 = vrot.slane %v350_v34, 1  ;;  %v361_v37 = vadd.f32 %v360_v35, %v359_v33 }
  0x28   : > { %v352_v38 = vadd.f32 %v351_v36, %v350_v34  ;;  %v362_v39 = vrot.slane %v361_v37, 1 }
  0x2a   : > { %v363_v40 = vadd.f32 %v362_v39, %v361_v37 }
  0x2c   : > { %v365_v41 = vsel %vm364_vm2, %v352_v38, %v363_v40 }
  0x2d   : > { %367 = vst.msk [vmem:[%s308_s9] sm:$0x3] %vm366_vm3, %v365_v41 }
  0x2e PF: > { %s15_s17 = sadd.s32 1, %s602_s17   ;;  %s684_s15 = smov %s598_s16 }
  0x2f   : > { %p12_p5 = scmp.ge.s32.totalorder %s15_s17, 4   ;;  %s685_s16 = smov %s687_s18 }
  0x31   :  { %14 = sbr.rel (!%p12_p5) target bundleno = 2 (0x2), region = 80 }

// kernel: model_forward.7
= control target key start
LH: loop header
LB: loop body
LE: loop exit
PB: predicated region body
PF: predicated region fallthrough
CT: control target
= control target key end

     0   :  { %s1495_s30 = smov 0   ;;  %s1497_s10 = smov 0   ;;  %s1619_s0 = inlined_call_operand.vmem [shape: bf16[2,16,32], index: 0, kind: input, shape index: {}, may-alias: {0,1,2}]   ;;  %s1620_s1 = inlined_call_operand.vmem [shape: bf16[2,16,32], index: 1, kind: input, shape index: {}, may-alias: {0,1,2}]   ;;  %s1621_s2 = inlined_call_operand.vmem [shape: bf16[2,16,32], index: 2, kind: input, shape index: {}, may-alias: {0,1,2}]   ;;  %s1622_s3 = inlined_call_operand.vmem [shape: bf16[2,16,32], index: 3, kind: input, shape index: {}]   ;;  %s1623_s4 = inlined_call_operand.vmem [shape: f32[2,2,32], index: 4, kind: input, shape index: {}]   ;;  %s1624_s5 = inlined_call_operand.vmem [shape: bf16[3,32,64], index: 5, kind: input, shape index: {}]   ;;  %s1625_s6 = inlined_call_operand.vmem [shape: bf16[32,32], index: 6, kind: input, shape index: {}]   ;;  %s1626_s7 = inlined_call_operand.vmem [shape: bf16[2,16,32], index: 7, kind: output, shape index: {0}]   ;;  %s1627_s8 = inlined_call_operand.vmem [shape: f32[2,1,2,32], index: 8, kind: output, shape index: {1}]   ;;  %s1628_s9 = inlined_call_operand.vmem [shape: bf16[2,16,32], index: 9, kind: output, shape index: {2}]  }
   0x1   :  { %s1499_s11 = smov 0  }
   0x2 LB: > { %s32_s12 = sadd.s32 1, %s1434_s10  ;;  %p1256_p0 = scmp.ge.s32.totalorder %s1438_s11, 1  ;;  %s1438_s11 = sphi %s1499_s11, %s20_s11   ;;  %s1434_s10 = sphi %s1497_s10, %s1630_s10   ;;  %s1430_s30 = sphi %s1495_s30, %s1629_s30  }
   0x3   : > { %p34_p1 = scmp.ge.s32.totalorder %s32_s12, 2  ;;  %p405_p2 = scmp.lt.s32.totalorder %s1438_s11, 3 }
   0x5   : > { %s1632_s12 = smov (%p34_p1, %s32_s12), 0  ;;  %p406_p3 = pnand %p1256_p0, %p405_p2 }
   0x6   : > { %p503_p4 = scmp.lt.s32.totalorder (!%p406_p3), %s1430_s30, 1 }
   0x7   : > { %409 = sbr.rel (%p406_p3) target bundleno = 599 (0x257), region = 48 }
   0xc   : > { %v1393_v0 = vld [vmem:[%s1624_s5 + $0x18] sm:$0xff]   ;;  %v1440_v1 = vmov 0.0   ;;  %v1394_v2 = vld [vmem:[%s1624_s5 + $0x8] sm:$0xff]   ;;  %v1395_v3 = vld [vmem:[%s1624_s5 + $0x10] sm:$0xff]   ;;  %vm1441_vm0 = vmmov 0   ;;  %s1634_s30 = smov (!%p503_p4, %s1430_s30), 1  ;;  %v949_v62 = vlaneseq }
   0xd   : > { %1332 = vmatprep.subr.bf16.mxu0 %v1440_v1  ;;  %1340 = vmatprep.subr.bf16.mxu1 %v1440_v1  ;;  %v1396_v4 = vld [vmem:[%s1624_s5] sm:$0xff]   ;;  %vm642_vm1 = vmpackc.low %vm1441_vm0, %vm1441_vm0  ;;  %vm1442_vm2 = vmmov 1   ;;  %v1443_v5 = vmov 0   ;;  %s1538_s21 = sshll.u32 %s1634_s30, 3  ;;  %vm601_vm4 = vcmask 1043456   ;;  %vm732_vm7 = vcmask 1044480  }
   0xe   : > { %1333 = vmatpush3.bf16.msra.mxu0 %v1393_v0  ;;  %1336 = vmatprep.mubr.msk.bf16.mxu0 %vm1441_vm0, %v1440_v1  ;;  %vm643_vm3 = vmpackc.low %vm1442_vm2, %vm1442_vm2  ;;  %v646_v6 = vsel %vm642_vm1, 65537, %v1443_v5  ;;  %s510_s24 = scalar_lea.vmem %s1619_s0, %s1538_s21  ;;  %s523_s27 = scalar_lea.vmem %s1620_s1, %s1538_s21  ;;  %vm687_vm8 = vcmask 261120   ;;  %v1400_v22 = vld [vmem:[%s1624_s5 + $0x28] sm:$0xff]   ;;  %v1401_v25 = vld [vmem:[%s1624_s5 + $0x20] sm:$0xff]   ;;  %vm797_vm9 = vcmask 1042432   ;;  %v950_v63 = vshrl.u32 %v949_v62, 7 }
   0xf   : > { %1341 = vmatpush3.bf16.msra.mxu1 %v1394_v2  ;;  %1334 = vmatprep.subr.bf16.mxu0 %v1440_v1  ;;  %v647_v7 = vsel %vm643_vm3, 65537, %v1443_v5  ;;  %s1307_s28 = sadd.s32 4, %s1538_s21  ;;  %v588_v10 = vld [vmem:[%s523_s27] sm:$0xf]  ;;  %v1398_v12 = vld [vmem:[%s510_s24 + $0x4] ss:$0 sps:$4 sm:$0xff]   ;;  %s583_s17 = scalar_lea.vmem %s1628_s9, %s1538_s21 }
  0x10   : > { %1342 = vmatprep.subr.bf16.mxu1 %v1440_v1  ;;  %1344 = vmatprep.mubr.msk.bf16.mxu1 %vm1441_vm0, %v1440_v1  ;;  %v1274_v8 = vcombine.low %v646_v6, %v647_v7  ;;  %v1275_v9 = vcombine.low %v647_v7, %v646_v6  ;;  %s539_s14 = scalar_lea.vmem %s1621_s2, %s1307_s28  ;;  %v1397_v11 = vld [vmem:[%s510_s24] ss:$0 sps:$4 sm:$0xff]   ;;  %v1402_v49 = vld [vmem:[%s1625_s6 + $0x8] sm:$0xff]   ;;  %s1444_s24 = smov 96   ;;  %v951_v0 = vsub.s32 0, %v950_v63  ;;  %v957_v5 = vsub.s32 1, %v950_v63 }
  0x11   : > { %v1399_v13 = vld [vmem:[%s539_s14] ss:$0 sps:$4 sm:$0xff]   ;;  %v604_v14 = vsel %vm601_vm4, %v588_v10, %v1397_v11  ;;  %s1265_s25 = sshll.u32 %s1634_s30, 1  ;;  %s552_s28 = scalar_lea.vmem %s1622_s3, %s1538_s21  ;;  %vm969_vm10 = vcmask 257024   ;;  %vm1004_vm11 = vcmask 1040384   ;;  %vm1006_vm12 = vcmask 254976  }
  0x12   : > { %1335 = vmatpush3.bf16.msra.mxu0 %v1395_v3  ;;  %vm656_vm5 = vcmp.ne.s16.totalorder %v1274_v8, 0  ;;  %vm657_vm6 = vcmp.ne.s16.totalorder %v1275_v9, 0  ;;  %v608_v15 = vsel %vm601_vm4, %v1398_v12, %v1399_v13  ;;  %v1403_v52 = vld [vmem:[%s1625_s6] sm:$0xff]   ;;  %s557_s14 = scalar_lea.vmem %s1623_s4, %s1265_s25  ;;  %s566_s20 = scalar_lea.vmem %s1626_s7, %s1538_s21 }
  0x13   : > { %1343 = vmatpush3.bf16.msra.mxu1 %v1396_v4  ;;  %1348 = vmatprep.subr.bf16.mxu0 %v1440_v1  ;;  %v658_v16 = vsel %vm656_vm5, %v604_v14, 0  ;;  %v659_v17 = vsel %vm657_vm6, %v608_v15, 0  ;;  %v1316_v2 = vld [vmem:[%s552_s28] sm:$0xff]   ;;  %s574_s23 = scalar_lea.vmem %s1627_s8, %s1265_s25 }
  0x14   : > { %1356 = vmatprep.subr.bf16.mxu1 %v1440_v1  ;;  %v672_v18 = vrot.slane %v658_v16, 4  ;;  %v733_v19 = vrot.slane %v658_v16, 3  ;;  %v673_v20 = vrot.slane %v659_v17, 4  ;;  %v734_v21 = vrot.slane %v659_v17, 3 }
  0x15   : > { %v798_v26 = vrot.slane %v658_v16, 5  ;;  %v799_v27 = vrot.slane %v659_v17, 5  ;;  %v1317_v3 = vunpack.c.l.bf16 %v1316_v2  ;;  %v1318_v9 = vunpack.c.h.bf16 %v1316_v2 }
  0x16   : > { %v674_v23 = vsel %vm601_vm4, %v672_v18, %v673_v20  ;;  %v735_v24 = vsel %vm732_vm7, %v733_v19, %v734_v21 }
  0x17   : > { %1337 = vmatmul.mubr.msk.bf16.vlgmr.msra.gmra.mxu0 %vm687_vm8, %v674_v23  ;;  %1345 = vmatmul.mubr.msk.bf16.vlgmr.msra.gmra.mxu1 %vm687_vm8, %v735_v24  ;;  %v800_v28 = vsel %vm797_vm9, %v798_v26, %v799_v27 }
  0x18   : > { %1349 = vmatpush3.bf16.msra.mxu0 %v1400_v22  ;;  %1352 = vmatprep.mubr.msk.bf16.mxu0 %vm1441_vm0, %v1440_v1 }
  0x19   : > { %1350 = vmatprep.subr.bf16.mxu0 %v1440_v1  ;;  %1360 = vmatprep.mubr.msk.bf16.mxu1 %vm1441_vm0, %v1440_v1 }
  0x1a   : > { %1357 = vmatpush3.bf16.msra.mxu1 %v1402_v49 }
  0x1b   : > { %1358 = vmatprep.subr.bf16.mxu1 %v1440_v1  ;;  %v944_v1 = vld [vmem:[%s557_s14] sm:$0x3] }
  0x1c   : > { %1351 = vmatpush3.bf16.msra.mxu0 %v1401_v25  ;;  %v952_v4 = vrot.slane %v944_v1, %v951_v0  ;;  %v958_v7 = vrot.slane %v944_v1, %v957_v5 }
  0x1e   : > { %1359 = vmatpush3.bf16.msra.mxu1 %v1403_v52  ;;  %v953_v6 = vmul.f32 %v1317_v3, %v952_v4  ;;  %v954_v11 = vmul.f32 %v1318_v9, %v952_v4 }
  0x1f   : > { %1353 = vmatmul.mubr.msk.bf16.vlgmr.msra.gmra.mxu0 %vm687_vm8, %v800_v28 }
  0x20   : > { %v959_v8 = vadd.f32 %v958_v7, %v953_v6  ;;  %v960_v12 = vadd.f32 %v958_v7, %v954_v11 }
  0x22   : > { %v1311_v10 = vpack.c.bf16 %v959_v8, %v959_v8  ;;  %v1312_v13 = vpack.c.bf16 %v960_v12, %v960_v12 }
  0x24   : > { %970 = vst.msk [vmem:[%s583_s17] sm:$0xf] %vm969_vm10, %v1311_v10  ;;  %971 = vst.msk [vmem:[%s583_s17 + $0x4] sm:$0xf] %vm969_vm10, %v1312_v13 }
  0xd7   : > { %v725_v29 = vpop.f32.mrf.mxu0  ;;  %v785_v30 = vpop.f32.mrf.mxu1 }
  0xd8   : > { %v786_v37 = vadd.f32 %v785_v30, %v725_v29 }
  0xd9   : > { %v1338_v31 = vpop.f32.mrf.mxu0  ;;  %v1346_v32 = vpop.f32.mrf.mxu1 }
  0xdb   : > { %v728_v33 = vpop.f32.mrf.mxu0  ;;  %v788_v34 = vpop.f32.mrf.mxu1 }
  0xdc   : > { %v789_v41 = vadd.f32 %v788_v34, %v728_v33 }
  0xdd   : > { %v1339_v35 = vpop.f32.mrf.mxu0  ;;  %v1347_v36 = vpop.f32.mrf.mxu1 }
  0xdf   : > { %v850_v38 = vpop.f32.mrf.mxu0 }
  0xe0   : > { %v857_v39 = vadd.f32 %v850_v38, %v786_v37 }
  0xe1   : > { %v1354_v40 = vpop.f32.mrf.mxu0 }
  0xe2   : > { %v1293_v42 = vmul.f32 -1.442695, %v857_v39 }
  0xe3   : > { %v853_v43 = vpop.f32.mrf.mxu0 }
  0xe4   : > { %1404 = vpow2.f32 %v1293_v42  ;;  %v858_v44 = vadd.f32 %v853_v43, %v789_v41 }
  0xe5   : > { %v1355_v45 = vpop.f32.mrf.mxu0 }
  0xe6   : > { %v1294_v46 = vmul.f32 -1.442695, %v858_v44 }
  0xe8   : > { %1406 = vpow2.f32 %v1294_v46 }
  0xf1   : > { %v1405_v47 = vpop.eup %1404 }
  0xf2   : > { %v867_v48 = vadd.f32 1.0, %v1405_v47 }
  0xf4   : > { %1408 = vrcp.f32 %v867_v48 }
  0xf5   : > { %v1407_v50 = vpop.eup %1406 }
  0xf6   : > { %v868_v51 = vadd.f32 1.0, %v1407_v50 }
  0xf8   : > { %1410 = vrcp.f32 %v868_v51 }
  0xf9   : > { %1412 = vtanh.f32 %v857_v39 }
  0xfa   : > { %1414 = vtanh.f32 %v858_v44 }
 0x101   : > { %v1409_v53 = vpop.eup %1408 }
 0x102   : > { %875 = vrot.lane.b32.xlu0 %v1409_v53, %s1444_s24 }
 0x105   : > { %v1411_v54 = vpop.eup %1410 }
 0x106   : > { %877 = vrot.lane.b32.xlu0 %v1411_v54, %s1444_s24  ;;  %v1413_v56 = vpop.eup %1412 }
 0x107   : > { %v1415_v57 = vpop.eup %1414 }
 0x174   : > { %v876_v55 = vpop.permute.xlu0 %875 }
 0x175   : > { %v881_v59 = vmul.f32 %v1413_v56, %v876_v55 }
 0x178   : > { %v878_v58 = vpop.permute.xlu0 %877 }
 0x179   : > { %v882_v60 = vmul.f32 %v1415_v57, %v878_v58 }
 0x17b   : > { %v883_v61 = vpack.c.bf16 %v882_v60, %v881_v59 }
 0x17d   : > { %1361 = vmatmul.mubr.msk.bf16.vlgmr.msra.gmra.mxu1 %vm687_vm8, %v883_v61 }
 0x23d   : > { %v937_v14 = vpop.f32.mrf.mxu1 }
 0x23e   : > { %v972_v15 = vadd.f32 %v959_v8, %v937_v14 }
 0x23f   : > { %v1362_v16 = vpop.f32.mrf.mxu1 }
 0x240   : > { %v1313_v17 = vpack.c.bf16 %v972_v15, %v972_v15  ;;  %v993_v19 = vmul.f32 %v972_v15, %v972_v15  ;;  %v984_v22 = vsel %vm687_vm8, %v972_v15, 0.0 }
 0x241   : > { %v940_v18 = vpop.f32.mrf.mxu1 }
 0x242   : > { %982 = vst.msk [vmem:[%s566_s20] sm:$0xf] %vm969_vm10, %v1313_v17  ;;  %v973_v20 = vadd.f32 %v960_v12, %v940_v18  ;;  %v995_v27 = vsel %vm687_vm8, %v993_v19, 0.0 }
 0x243   : > { %v1363_v21 = vpop.f32.mrf.mxu1 }
 0x244   : > { %v1314_v23 = vpack.c.bf16 %v973_v20, %v973_v20  ;;  %v985_v24 = vsel %vm687_vm8, %v973_v20, 0.0  ;;  %v994_v25 = vmul.f32 %v973_v20, %v973_v20 }
 0x245   : > { %v986_v26 = vadd.f32 %v985_v24, %v984_v22 }
 0x246   : > { %983 = vst.msk [vmem:[%s566_s20 + $0x4] sm:$0xf] %vm969_vm10, %v1314_v23  ;;  %v996_v28 = vsel %vm687_vm8, %v994_v25, 0.0 }
 0x247   : > { %v987_v29 = vrot.slane %v986_v26, 4  ;;  %v997_v30 = vadd.f32 %v996_v28, %v995_v27 }
 0x249   : > { %v988_v31 = vadd.f32 %v987_v29, %v986_v26  ;;  %v998_v32 = vrot.slane %v997_v30, 4 }
 0x24b   : > { %v989_v33 = vrot.slane %v988_v31, 2  ;;  %v999_v34 = vadd.f32 %v998_v32, %v997_v30 }
 0x24d   : > { %v990_v35 = vadd.f32 %v989_v33, %v988_v31  ;;  %v1000_v36 = vrot.slane %v999_v34, 2 }
 0x24f   : > { %v991_v37 = vrot.slane %v990_v35, 1  ;;  %v1001_v38 = vadd.f32 %v1000_v36, %v999_v34 }
 0x251   : > { %v1002_v39 = vrot.slane %v1001_v38, 1  ;;  %v992_v40 = vadd.f32 %v991_v37, %v990_v35 }
 0x253   : > { %v1003_v41 = vadd.f32 %v1002_v39, %v1001_v38 }
 0x255   : > { %v1005_v42 = vsel %vm1004_vm11, %v992_v40, %v1003_v41 }
 0x256   : > { %1007 = vst.msk [vmem:[%s574_s23] sm:$0x3] %vm1006_vm12, %v1005_v42 }
 0x257 PF: > { %s20_s11 = sadd.s32 1, %s1438_s11   ;;  %s1629_s30 = smov %s1434_s10 }
 0x258   : > { %p17_p5 = scmp.ge.s32.totalorder %s20_s11, 4   ;;  %s1630_s10 = smov %s1632_s12 }
 0x25a   :  { %19 = sbr.rel (!%p17_p5) target bundleno = 2 (0x2), region = 116 }

// kernel: model_forward.9
= control target key start
LH: loop header
LB: loop body
LE: loop exit
PB: predicated region body
PF: predicated region fallthrough
CT: control target
= control target key end

     0   :  { %s1656_s13 = smov 0   ;;  %s1658_s14 = smov 0   ;;  %s1795_s0 = inlined_call_operand.vmem [shape: bf16[2,16,32], index: 0, kind: input, shape index: {}, may-alias: {0,1,2}]   ;;  %s1796_s1 = inlined_call_operand.vmem [shape: bf16[2,16,32], index: 1, kind: input, shape index: {}, may-alias: {0,1,2}]   ;;  %s1797_s2 = inlined_call_operand.vmem [shape: bf16[2,16,32], index: 2, kind: input, shape index: {}, may-alias: {0,1,2}]   ;;  %s1798_s3 = inlined_call_operand.vmem [shape: f32[2,2,32], index: 3, kind: input, shape index: {}]   ;;  %s1799_s4 = inlined_call_operand.vmem [shape: bf16[3,32,32], index: 4, kind: input, shape index: {}]   ;;  %s1800_s5 = inlined_call_operand.vmem [shape: f32[1,32], index: 5, kind: input, shape index: {}]   ;;  %s1801_s6 = inlined_call_operand.vmem [shape: bf16[3,32,32], index: 6, kind: input, shape index: {}]   ;;  %s1802_s7 = inlined_call_operand.vmem [shape: f32[1,32], index: 7, kind: input, shape index: {}]   ;;  %s1803_s8 = inlined_call_operand.vmem [shape: bf16[32,128], index: 8, kind: input, shape index: {}]   ;;  %s1804_s9 = inlined_call_operand.vmem [shape: f32[1,128], index: 9, kind: input, shape index: {}]   ;;  %s1805_s10 = inlined_call_operand.vmem [shape: f32[2,16,128], index: 10, kind: output, shape index: {}]  }
   0x1   :  { %s1660_s15 = smov 0  }
   0x2 LB: > { %s32_s16 = sadd.s32 1, %s1593_s14  ;;  %p1378_p0 = scmp.ge.s32.totalorder %s1597_s15, 1  ;;  %s1597_s15 = sphi %s1660_s15, %s20_s15   ;;  %s1593_s14 = sphi %s1658_s14, %s1807_s14   ;;  %s1589_s13 = sphi %s1656_s13, %s1806_s13  }
   0x3   : > { %p34_p1 = scmp.ge.s32.totalorder %s32_s16, 2  ;;  %p404_p2 = scmp.lt.s32.totalorder %s1597_s15, 3 }
   0x5   : > { %s1809_s16 = smov (%p34_p1, %s32_s16), 0  ;;  %p405_p3 = pnand %p1378_p0, %p404_p2 }
   0x6   : > { %p479_p4 = scmp.lt.s32.totalorder (!%p405_p3), %s1589_s13, 1 }
   0x7   : > { %408 = sbr.rel (%p405_p3) target bundleno = 727 (0x2d7), region = 60 }
   0xc   : > { %v1548_v0 = vld [vmem:[%s1799_s4 + $0x18] sm:$0xff]   ;;  %v562_v1 = vlaneseq  ;;  %v1549_v2 = vld [vmem:[%s1799_s4 + $0x8] sm:$0xff]   ;;  %v1550_v3 = vld [vmem:[%s1799_s4 + $0x10] sm:$0xff]   ;;  %s1811_s13 = smov (!%p479_p4, %s1589_s13), 1  ;;  %vm548_vm0 = vcmask 1043456   ;;  %v1599_v16 = vmov 0.0  }
   0xd   : > { %1466 = vmatprep.subr.bf16.mxu0 %v1548_v0  ;;  %1474 = vmatprep.subr.bf16.mxu1 %v1549_v2  ;;  %v1551_v4 = vld [vmem:[%s1799_s4] sm:$0xff]   ;;  %s1436_s25 = sshll.u32 %s1811_s13, 3  ;;  %s1385_s26 = sshll.u32 %s1811_s13, 1  ;;  %v1702_v7 = vld [vmem:[%s1799_s4 + $0x28] sm:$0xff]   ;;  %vm748_vm1 = vcmask 1044480   ;;  %vm691_vm2 = vcmask 261120  }
   0xe   : > { %1467 = vmatpush3.bf16.msra.mxu0 %v1548_v0  ;;  %v1688_v5 = vshrl.u32 %v562_v1, 7  ;;  %1475 = vmatpush3.bf16.msra.mxu1 %v1549_v2  ;;  %s486_s29 = scalar_lea.vmem %s1795_s0, %s1436_s25  ;;  %s499_s12 = scalar_lea.vmem %s1796_s1, %s1436_s25  ;;  %vm661_vm3 = vsmask.f32 4352  ;;  %v1556_v61 = vld [vmem:[%s1799_s4 + $0x20] sm:$0xff]   ;;  %v1557_v63 = vld [vmem:[%s1801_s6 + $0x8] sm:$0xff]   ;;  %v1559_v1 = vld [vmem:[%s1801_s6 + $0x18] sm:$0xff]  }
   0xf   : > { %1468 = vmatprep.subr.bf16.mxu0 %v1550_v3  ;;  %1476 = vmatprep.subr.bf16.mxu1 %v1551_v4  ;;  %s1439_s19 = sadd.s32 4, %s1436_s25  ;;  %s523_s22 = scalar_lea.vmem %s1798_s3, %s1385_s26  ;;  %v535_v8 = vld [vmem:[%s499_s12] sm:$0xf]  ;;  %v1553_v11 = vld [vmem:[%s486_s29 + $0x4] ss:$0 sps:$4 sm:$0xff]   ;;  %vm1600_vm4 = vmmov 0  }
  0x10   : > { %v564_v6 = vsub.s32 0, %v1688_v5  ;;  %v572_v9 = vsub.s32 1, %v1688_v5  ;;  %s515_s27 = scalar_lea.vmem %s1797_s2, %s1439_s19  ;;  %v1552_v10 = vld [vmem:[%s486_s29] ss:$0 sps:$4 sm:$0xff]   ;;  %v1560_v2 = vld [vmem:[%s1801_s6 + $0x10] sm:$0xff]   ;;  %vm1098_vm8 = vcmask 1046528  }
  0x11   : > { %v1554_v12 = vld [vmem:[%s515_s27] ss:$0 sps:$4 sm:$0xff]   ;;  %v551_v14 = vsel %vm548_vm0, %v535_v8, %v1552_v10  ;;  %vm967_vm7 = vsmask.f32 7424  ;;  %s1440_s12 = sshll.u32 %s1811_s13, 4 }
  0x12   : > { %1469 = vmatpush3.bf16.msra.mxu0 %v1550_v3  ;;  %1477 = vmatpush3.bf16.msra.mxu1 %v1551_v4  ;;  %v561_v13 = vld [vmem:[%s523_s22] sm:$0x3]  ;;  %v555_v17 = vsel %vm548_vm0, %v1553_v11, %v1554_v12  ;;  %v558_v18 = vunpack.c.h.bf16 %v551_v14  ;;  %s532_s21 = scalar_lea.vmem %s1805_s10, %s1440_s12 }
  0x13   : > { %1482 = vmatprep.subr.bf16.mxu0 %v1702_v7  ;;  %v565_v15 = vrot.slane %v561_v13, %v564_v6  ;;  %1490 = vmatprep.subr.bf16.mxu1 %v1599_v16  ;;  %v573_v19 = vrot.slane %v561_v13, %v572_v9  ;;  %v559_v20 = vunpack.c.l.bf16 %v555_v17  ;;  %v1558_v0 = vld [vmem:[%s1801_s6] sm:$0xff]  }
  0x14   : > { %v1411_v13 = vld [vmem:[%s1800_s5] ss:$0 sm:$0xff] }
  0x15   : > { %v567_v21 = vmul.f32 %v565_v15, %v558_v18  ;;  %v568_v22 = vmul.f32 %v565_v15, %v559_v20 }
  0x17   : > { %v575_v23 = vadd.f32 %v573_v19, %v567_v21  ;;  %v576_v24 = vadd.f32 %v573_v19, %v568_v22 }
  0x19   : > { %v615_v25 = vmul.f32 %v575_v23, %v575_v23  ;;  %v616_v26 = vmul.f32 %v576_v24, %v576_v24 }
  0x1b   : > { %v619_v27 = vmul.f32 %v615_v25, %v575_v23  ;;  %v620_v28 = vmul.f32 %v616_v26, %v576_v24 }
  0x1d   : > { %v623_v29 = vmul.f32 0.044715, %v619_v27  ;;  %v624_v30 = vmul.f32 0.044715, %v620_v28 }
  0x1f   : > { %v627_v31 = vadd.f32 %v623_v29, %v575_v23  ;;  %v628_v32 = vadd.f32 %v624_v30, %v576_v24 }
  0x21   : > { %v631_v33 = vmul.f32 0.7978846, %v627_v31  ;;  %v632_v34 = vmul.f32 0.7978846, %v628_v32 }
  0x23   : > { %1565 = vtanh.f32 %v631_v33 }
  0x24   : > { %1567 = vtanh.f32 %v632_v34 }
  0x30   : > { %v1566_v35 = vpop.eup %1565 }
  0x31   : > { %v1568_v36 = vpop.eup %1567  ;;  %v639_v37 = vadd.f32 1.0, %v1566_v35 }
  0x32   : > { %v640_v38 = vadd.f32 1.0, %v1568_v36 }
  0x33   : > { %v643_v39 = vmul.f32 0.5, %v639_v37 }
  0x34   : > { %v644_v40 = vmul.f32 0.5, %v640_v38 }
  0x35   : > { %v647_v41 = vmul.f32 %v643_v39, %v575_v23 }
  0x36   : > { %v648_v42 = vmul.f32 %v644_v40, %v576_v24 }
  0x37   : > { %v650_v43 = vpack.c.bf16 %v647_v41, %v1599_v16 }
  0x38   : > { %v651_v44 = vpack.c.bf16 %v1599_v16, %v648_v42  ;;  %v583_v42 = vadd.s32 16, %v1688_v5 }
  0x39   : > { %v663_v45 = vshrl.u32 %v650_v43, 16  ;;  %v666_v46 = vshll.u32 %v650_v43, 16  ;;  %v749_v47 = vrot.slane %v650_v43, 3  ;;  %v824_v53 = vrot.slane %v650_v43, 4 }
  0x3a   : > { %v671_v48 = vshrl.u32 %v651_v44, 16  ;;  %v674_v49 = vshll.u32 %v651_v44, 16  ;;  %v750_v50 = vrot.slane %v651_v44, 3  ;;  %v825_v57 = vrot.slane %v651_v44, 4 }
  0x3b   : > { %v665_v51 = vrot.slane %v663_v45, 3  ;;  %v668_v52 = vrot.slane %v666_v46, 4  ;;  %v937_v45 = vadd.s32 4294967295, %v583_v42 }
  0x3c   : > { %v673_v54 = vrot.slane %v671_v48, 3  ;;  %v676_v55 = vrot.slane %v674_v49, 4  ;;  %v751_v56 = vsel %vm748_vm1, %v749_v47, %v750_v50  ;;  %v826_v62 = vsel %vm548_vm0, %v824_v53, %v825_v57 }
  0x3d   : > { %v669_v58 = vor.u32 %v668_v52, %v665_v51  ;;  %1478 = vmatprep.mubr.msk.bf16.mxu1 %vm691_vm2, %v751_v56  ;;  %vm943_vm5 = vcmp.lt.s32.totalorder %v937_v45, 16  ;;  %v935_v51 = vadd.s32 4294967295, %v1688_v5 }
  0x3e   : > { %v677_v59 = vor.u32 %v676_v55, %v673_v54  ;;  %1479 = vmatmul.mubr.msk.bf16.vlgmr.msra.gmra.mxu1 %vm691_vm2, %v750_v50 }
  0x3f   : > { %1491 = vmatpush3.bf16.msra.mxu1 %v1559_v1  ;;  %1494 = vmatprep.mubr.msk.bf16.mxu1 %vm1600_vm4, %v1599_v16  ;;  %vm938_vm6 = vcmp.ge.s32.totalorder %v935_v51, 0 }
  0x40   : > { %v678_v60 = vsel %vm661_vm3, %v669_v58, %v677_v59  ;;  %1492 = vmatprep.subr.bf16.mxu1 %v1599_v16 }
  0x41   : > { %1470 = vmatprep.mubr.msk.bf16.mxu0 %vm691_vm2, %v678_v60 }
  0x42   : > { %1471 = vmatmul.mubr.msk.bf16.vlgmr.msra.gmra.mxu0 %vm691_vm2, %v677_v59 }
  0x43   : > { %1483 = vmatpush3.bf16.msra.mxu0 %v1702_v7  ;;  %1486 = vmatprep.mubr.msk.bf16.mxu0 %vm691_vm2, %v826_v62 }
  0x44   : > { %1484 = vmatprep.subr.bf16.mxu0 %v1556_v61  ;;  %1493 = vmatpush3.bf16.msra.mxu1 %v1560_v2  ;;  %v1561_v2 = vld [vmem:[%s1801_s6 + $0x28] sm:$0xff]  }
  0x45   : > { %1506 = vmatprep.subr.bf16.mxu1 %v1599_v16 }
  0x47   : > { %1485 = vmatpush3.bf16.msra.mxu0 %v1556_v61 }
  0x48   : > { %1498 = vmatprep.subr.bf16.mxu0 %v1599_v16 }
  0x4a   : > { %1487 = vmatmul.mubr.msk.bf16.vlgmr.msra.gmra.mxu0 %vm691_vm2, %v825_v57 }
  0x4b   : > { %1499 = vmatpush3.bf16.msra.mxu0 %v1557_v63  ;;  %1502 = vmatprep.mubr.msk.bf16.mxu0 %vm1600_vm4, %v1599_v16 }
  0x4c   : > { %1500 = vmatprep.subr.bf16.mxu0 %v1599_v16 }
  0x4f   : > { %1501 = vmatpush3.bf16.msra.mxu0 %v1558_v0 }
  0x50   : > { %1514 = vmatprep.subr.bf16.mxu0 %v1599_v16 }
  0xfe   : > { %v1480_v3 = vpop.f32.mrf.mxu1 }
 0x100   : > { %v804_v4 = vpop.f32.mrf.mxu1 }
 0x102   : > { %v1472_v6 = vpop.f32.mrf.mxu0  ;;  %v1481_v7 = vpop.f32.mrf.mxu1 }
 0x103   : > { %v813_v11 = vadd.f32 %v1480_v3, %v1472_v6 }
 0x104   : > { %v732_v8 = vpop.f32.mrf.mxu0  ;;  %v807_v17 = vpop.f32.mrf.mxu1 }
 0x105   : > { %v805_v14 = vadd.f32 %v804_v4, %v732_v8  ;;  %v1562_v4 = vld [vmem:[%s1801_s6 + $0x20] sm:$0xff]  }
 0x106   : > { %v1473_v9 = vpop.f32.mrf.mxu0 }
 0x107   : > { %v1563_v9 = vld [vmem:[%s1803_s8 + $0x8] sm:$0xff]  }
 0x108   : > { %v735_v10 = vpop.f32.mrf.mxu0 }
 0x109   : > { %v808_v22 = vadd.f32 %v807_v17, %v735_v10  ;;  %v1564_v10 = vld [vmem:[%s1803_s8] sm:$0xff]  }
 0x10a   : > { %v1488_v12 = vpop.f32.mrf.mxu0 }
 0x10b   : > { %v895_v15 = vadd.f32 %v1488_v12, %v813_v11 }
 0x10c   : > { %v879_v18 = vpop.f32.mrf.mxu0 }
 0x10d   : > { %v905_v19 = vadd.f32 %v1411_v13, %v895_v15  ;;  %v893_v20 = vadd.f32 %v879_v18, %v805_v14 }
 0x10e   : > { %v1489_v21 = vpop.f32.mrf.mxu0 }
 0x10f   : > { %v908_v23 = vmul.f32 %v905_v19, %v905_v19  ;;  %v903_v24 = vadd.f32 %v1411_v13, %v893_v20 }
 0x110   : > { %v882_v25 = vpop.f32.mrf.mxu0 }
 0x111   : > { %v911_v26 = vmul.f32 %v908_v23, %v905_v19  ;;  %v906_v27 = vmul.f32 %v903_v24, %v903_v24  ;;  %v894_v28 = vadd.f32 %v882_v25, %v808_v22 }
 0x113   : > { %v914_v29 = vmul.f32 0.044715, %v911_v26  ;;  %v909_v30 = vmul.f32 %v906_v27, %v903_v24  ;;  %v904_v31 = vadd.f32 %v1411_v13, %v894_v28 }
 0x115   : > { %v917_v32 = vadd.f32 %v914_v29, %v905_v19  ;;  %v912_v33 = vmul.f32 0.044715, %v909_v30  ;;  %v907_v34 = vmul.f32 %v904_v31, %v904_v31 }
 0x117   : > { %v920_v35 = vmul.f32 0.7978846, %v917_v32  ;;  %v915_v36 = vadd.f32 %v912_v33, %v903_v24  ;;  %v910_v37 = vmul.f32 %v907_v34, %v904_v31 }
 0x119   : > { %1569 = vtanh.f32 %v920_v35  ;;  %v918_v38 = vmul.f32 0.7978846, %v915_v36  ;;  %v913_v39 = vmul.f32 0.044715, %v910_v37 }
 0x11b   : > { %1571 = vtanh.f32 %v918_v38  ;;  %v916_v40 = vadd.f32 %v913_v39, %v904_v31 }
 0x11d   : > { %v919_v41 = vmul.f32 0.7978846, %v916_v40 }
 0x11f   : > { %1573 = vtanh.f32 %v919_v41 }
 0x126   : > { %v1570_v43 = vpop.eup %1569 }
 0x127   : > { %v926_v44 = vadd.f32 1.0, %v1570_v43 }
 0x128   : > { %v1572_v46 = vpop.eup %1571 }
 0x129   : > { %v929_v47 = vmul.f32 0.5, %v926_v44  ;;  %v924_v48 = vadd.f32 1.0, %v1572_v46 }
 0x12b   : > { %v932_v49 = vmul.f32 %v929_v47, %v905_v19  ;;  %v927_v50 = vmul.f32 0.5, %v924_v48 }
 0x12c   : > { %v1574_v52 = vpop.eup %1573 }
 0x12d   : > { %v925_v53 = vadd.f32 1.0, %v1574_v52  ;;  %v955_v54 = vsel %vm943_vm5, %v932_v49, 0.0  ;;  %v930_v55 = vmul.f32 %v927_v50, %v903_v24 }
 0x12e   : > { %v957_v58 = vpack.c.bf16 %v955_v54, %v955_v54 }
 0x12f   : > { %v928_v56 = vmul.f32 0.5, %v925_v53  ;;  %v953_v59 = vsel %vm938_vm6, %v930_v55, 0.0 }
 0x130   : > { %v976_v62 = vshll.u32 %v957_v58, 16  ;;  %v1100_v7 = vrot.slane %v957_v58, 1 }
 0x131   : > { %v931_v57 = vmul.f32 %v928_v56, %v904_v31  ;;  %v1430_v31 = vld [vmem:[%s1804_s9] ss:$0 sm:$0xff] }
 0x132   : > { %v978_v1 = vrot.slane %v976_v62, 1 }
 0x133   : > { %v956_v60 = vpack.c.bf16 %v931_v57, %v953_v59 }
 0x135   : > { %1503 = vmatmul.mubr.msk.bf16.vlgmr.msra.gmra.mxu0 %vm691_vm2, %v956_v60  ;;  %v971_v61 = vshll.u32 %v956_v60, 16  ;;  %v969_v63 = vshrl.u32 %v956_v60, 16  ;;  %v1099_v6 = vrot.slane %v956_v60, 1 }
 0x136   : > { %1518 = vmatprep.mubr.msk.bf16.mxu0 %vm1600_vm4, %v1599_v16  ;;  %1515 = vmatpush3.bf16.msra.mxu0 %v1563_v9 }
 0x137   : > { %v973_v0 = vrot.slane %v971_v61, 1  ;;  %v1101_v8 = vsel %vm1098_vm8, %v1099_v6, %v1100_v7  ;;  %1516 = vmatprep.subr.bf16.mxu0 %v1599_v16 }
 0x139   : > { %v974_v5 = vor.u32 %v973_v0, %v969_v63 }
 0x13a   : > { %1517 = vmatpush3.bf16.msra.mxu0 %v1564_v10 }
 0x13b   : > { %v979_v3 = vsel %vm967_vm7, %v974_v5, %v978_v1 }
 0x13c   : > { %1495 = vmatmul.mubr.msk.bf16.vlgmr.msra.gmra.mxu1 %vm691_vm2, %v979_v3 }
 0x13d   : > { %1507 = vmatpush3.bf16.msra.mxu1 %v1561_v2  ;;  %1510 = vmatprep.mubr.msk.bf16.mxu1 %vm1600_vm4, %v1599_v16 }
 0x13e   : > { %1508 = vmatprep.subr.bf16.mxu1 %v1599_v16  ;;  %v1429_v16 = vld [vmem:[%s1802_s7] ss:$0 sm:$0xff] }
 0x141   : > { %1509 = vmatpush3.bf16.msra.mxu1 %v1562_v4 }
 0x144   : > { %1511 = vmatmul.mubr.msk.bf16.vlgmr.msra.gmra.mxu1 %vm691_vm2, %v1101_v8 }
 0x1f5   : > { %v1084_v11 = vpop.f32.mrf.mxu0 }
 0x1f7   : > { %v1504_v12 = vpop.f32.mrf.mxu0 }
 0x1f9   : > { %v1087_v13 = vpop.f32.mrf.mxu0 }
 0x1fb   : > { %v1505_v14 = vpop.f32.mrf.mxu0 }
 0x1fc   : > { %v1029_v15 = vpop.f32.mrf.mxu1 }
 0x1fd   : > { %v1085_v21 = vadd.f32 %v1084_v11, %v1029_v15 }
 0x1fe   : > { %v1496_v17 = vpop.f32.mrf.mxu1 }
 0x200   : > { %v1032_v18 = vpop.f32.mrf.mxu1 }
 0x201   : > { %v1088_v23 = vadd.f32 %v1087_v13, %v1032_v18 }
 0x202   : > { %v1497_v19 = vpop.f32.mrf.mxu1 }
 0x204   : > { %v1151_v20 = vpop.f32.mrf.mxu1 }
 0x205   : > { %v1158_v24 = vadd.f32 %v1151_v20, %v1085_v21 }
 0x206   : > { %v1512_v22 = vpop.f32.mrf.mxu1 }
 0x207   : > { %v1167_v28 = vadd.f32 %v1429_v16, %v1158_v24 }
 0x208   : > { %v1154_v25 = vpop.f32.mrf.mxu1 }
 0x209   : > { %v1159_v26 = vadd.f32 %v1154_v25, %v1088_v23 }
 0x20a   : > { %v1513_v27 = vpop.f32.mrf.mxu1 }
 0x20b   : > { %v1168_v29 = vadd.f32 %v1429_v16, %v1159_v26 }
 0x20d   : > { %v1169_v30 = vpack.c.bf16 %v1168_v29, %v1167_v28 }
 0x20f   : > { %1519 = vmatmul.mubr.msk.bf16.vlgmr.msra.gmra.mxu0 %vm691_vm2, %v1169_v30 }
 0x2cf   : > { %v1230_v32 = vpop.f32.mrf.mxu0 }
 0x2d0   : > { %v1231_v33 = vadd.f32 %v1430_v31, %v1230_v32 }
 0x2d1   : > { %v1520_v34 = vpop.f32.mrf.mxu0 }
 0x2d2   : > { %1237 = vst [vmem:[%s532_s21] sm:$0xff] %v1231_v33 }
 0x2d3   : > { %v1233_v35 = vpop.f32.mrf.mxu0 }
 0x2d4   : > { %v1234_v36 = vadd.f32 %v1430_v31, %v1233_v35 }
 0x2d5   : > { %v1521_v37 = vpop.f32.mrf.mxu0 }
 0x2d6   : > { %1238 = vst [vmem:[%s532_s21 + $0x8] sm:$0xff] %v1234_v36 }
 0x2d7 PF: > { %s20_s15 = sadd.s32 1, %s1597_s15   ;;  %s1806_s13 = smov %s1593_s14 }
 0x2d8   : > { %p17_p5 = scmp.ge.s32.totalorder %s20_s15, 4   ;;  %s1807_s14 = smov %s1809_s16 }
 0x2da   :  { %19 = sbr.rel (!%p17_p5) target bundleno = 2 (0x2), region = 103 }

</bundles_post_ra>
